<compile_context>
chip_gen: v6e
topology: v6e:2x2x1
jax: 0.10.0
libtpu: 0.0.40
codegen_flags: <defaults>
</compile_context>

<pallas_src>
import functools

import jax
import jax.numpy as jnp
from jax import lax
from jax.experimental import pallas as pl
from jax.experimental.pallas import tpu as pltpu

HIDDEN = 50000    # hardcoded in NeuralNet.__init__ (nn.Linear(in_layer, 50000))
TILE_N = 12544    # HIDDEN tile = 98 * 128; Hp = 50176 = 4 * TILE_N
MAX_PAR = 2       # v7x TensorCore split of the HIDDEN axis


def _num_tensorcores_per_chip():
    """Best-effort detection: v7x has 2 TensorCores per chip, v5e/v6e have 1."""
    try:
        kind = jax.devices()[0].device_kind.lower().replace(" ", "")
    except Exception:  # pragma: no cover - defensive
        return 1
    return 2 if ("v7" in kind or "tpu7" in kind) else 1


def _fused_mlp_kernel(x_ref, w1_ref, b1_ref, w2_ref, b2_ref, o_ref,
                      *, red_axis, fuse_epilogue):
    k = pl.program_id(red_axis)

    @pl.when(k == 0)
    def _():
        o_ref[...] = jnp.zeros_like(o_ref)

    # Layer 1 tile: h = relu(x_bf16 @ W1_tile_bf16 + b1_tile_f32)   (Bp, tn) f32
    h = jnp.maximum(
        jnp.dot(x_ref[...], w1_ref[...], preferred_element_type=jnp.float32)
        + b1_ref[...],
        0.0,
    )
    # Layer 2 partial: accumulate h @ W2_tile^T into the resident output block.
    # TODO(synk): if a v7x bundle shows a per-step vxpose of the (OutP, tn) W2
    # tile becoming the binding slot, restructure to transpose h instead.
    o_ref[...] += lax.dot_general(
        h,
        w2_ref[...],
        dimension_numbers=(((1,), (1,)), ((), ())),
        preferred_element_type=jnp.float32,
    )

    if fuse_epilogue:
        @pl.when(k == pl.num_programs(red_axis) - 1)
        def _():
            # b2 added exactly once, after the full HIDDEN reduction.
            o_ref[...] = jnp.maximum(o_ref[...] + b2_ref[...], 0.0)


def fused_mlp(xp, w1t, b1p, w2p, b2p, *, tn=TILE_N, n_par=1, core_parallel=False):
    """relu(x @ W1 + b1) @ W2^T streamed over HIDDEN tiles.

    n_par == 1: returns (Bp, OutP) with b2 + final ReLU fused in-kernel.
    n_par >= 2: returns (n_par, Bp, OutP) partial sums (epilogue done outside).
    """
    Bp, Kp = xp.shape
    Kw, Hp = w1t.shape
    OutP, Hw = w2p.shape
    assert Kp == Kw and Hp == Hw
    assert Bp % 8 == 0 and Kp % 8 == 0 and OutP % 8 == 0
    assert tn % 128 == 0 and Hp % (n_par * tn) == 0
    ks = Hp // (n_par * tn)  # reduction steps (per parallel half if n_par > 1)

    if n_par == 1:
        grid = (ks,)
        red_axis = 0
        in_specs = [
            pl.BlockSpec((Bp, Kp), lambda k: (0, 0)),      # x (VMEM-resident)
            pl.BlockSpec((Kp, tn), lambda k: (0, k)),      # W1 tile (bf16)
            pl.BlockSpec((1, tn), lambda k: (0, k)),       # b1 tile (f32)
            pl.BlockSpec((OutP, tn), lambda k: (0, k)),    # W2 tile (f32)
            pl.BlockSpec((1, OutP), lambda k: (0, 0)),     # b2 (f32)
        ]
        out_specs = pl.BlockSpec((Bp, OutP), lambda k: (0, 0))
        out_shape = jax.ShapeDtypeStruct((Bp, OutP), jnp.float32)
        dim_sem = ("arbitrary",)
        fuse_epilogue = True
    else:
        grid = (n_par, ks)
        red_axis = 1
        in_specs = [
            pl.BlockSpec((Bp, Kp), lambda p, k: (0, 0)),
            pl.BlockSpec((Kp, tn), lambda p, k: (0, p * ks + k)),
            pl.BlockSpec((1, tn), lambda p, k: (0, p * ks + k)),
            pl.BlockSpec((OutP, tn), lambda p, k: (0, p * ks + k)),
            pl.BlockSpec((1, OutP), lambda p, k: (0, 0)),
        ]
        out_specs = pl.BlockSpec((None, Bp, OutP), lambda p, k: (p, 0, 0))
        out_shape = jax.ShapeDtypeStruct((n_par, Bp, OutP), jnp.float32)
        par_sem = pltpu.CORE_PARALLEL if core_parallel else "parallel"
        dim_sem = (par_sem, pltpu.ARBITRARY if core_parallel else "arbitrary")
        fuse_epilogue = False

    kernel = functools.partial(
        _fused_mlp_kernel, red_axis=red_axis, fuse_epilogue=fuse_epilogue
    )
    return pl.pallas_call(
        kernel,
        out_shape=out_shape,
        grid_spec=pltpu.PrefetchScalarGridSpec(
            num_scalar_prefetch=0,
            grid=grid,
            in_specs=in_specs,
            out_specs=out_specs,
        ),
        compiler_params=pltpu.CompilerParams(dimension_semantics=dim_sem),
    )(xp, w1t, b1p, w2p, b2p)


def _pad_to(a, axis, multiple):
    pad = (-a.shape[axis]) % multiple
    if pad == 0:
        return a
    widths = [(0, 0)] * a.ndim
    widths[axis] = (0, pad)
    return jnp.pad(a, widths)


def prepare_params(w1, b1, w2, b2, *, tn=TILE_N, max_par=MAX_PAR):
    """One-time weight layout (keep OUT of the jitted forward).

    w1:(H,K) -> w1t:(Kp,Hp) bf16;  b1:(H,) -> b1p:(1,Hp) f32;
    w2:(Out,H) -> w2p:(OutP,Hp) f32 (lane-dense, no transpose);
    b2:(Out,) -> b2p:(1,OutP) f32.
    Zero padding is numerically benign: padded hidden units are relu(0+0)=0 and
    padded output columns are sliced away.
    """
    chunk = max_par * tn  # Hp works for both the 1-TC and 2-TC grid layouts
    w1t = _pad_to(_pad_to(w1.T, 0, 8), 1, chunk).astype(jnp.bfloat16)  # (Kp, Hp)
    b1p = _pad_to(b1[None, :], 1, chunk)                               # (1, Hp)
    w2p = _pad_to(_pad_to(w2, 0, 8), 1, chunk)                         # (OutP, Hp)
    b2p = _pad_to(b2[None, :], 1, w2p.shape[0])                        # (1, OutP)
    return w1t, b1p, w2p, b2p


def init_params(key, in_layer, out_layer):
    """Deterministic PyTorch-style (uniform +/- 1/sqrt(fan_in)) init."""
    k1, k2, k3, k4 = jax.random.split(key, 4)
    bnd1 = 1.0 / jnp.sqrt(in_layer)
    bnd2 = 1.0 / jnp.sqrt(HIDDEN)
    w1 = jax.random.uniform(k1, (HIDDEN, in_layer), jnp.float32, -bnd1, bnd1)
    b1 = jax.random.uniform(k2, (HIDDEN,), jnp.float32, -bnd1, bnd1)
    w2 = jax.random.uniform(k3, (out_layer, HIDDEN), jnp.float32, -bnd2, bnd2)
    b2 = jax.random.uniform(k4, (out_layer,), jnp.float32, -bnd2, bnd2)
    return w1, b1, w2, b2


@functools.partial(jax.jit, static_argnames=("out_layer", "n_par", "core_parallel"))
def neural_net_forward(x, w1t, b1p, w2p, b2p, *, out_layer, n_par=1,
                       core_parallel=False):
    B, _ = x.shape
    # pad batch to 8 sublanes and K to a multiple of 8 (matches prepared W1),
    # then feed x in bf16 so the layer-1 matmul is a pure bf16 MXU pass.
    xp = _pad_to(_pad_to(x, 0, 8), 1, 8).astype(jnp.bfloat16)
    assert xp.shape[1] == w1t.shape[0]

    if n_par == 1:
        # b2 + final ReLU already fused into the kernel's last grid step.
        y = fused_mlp(xp, w1t, b1p, w2p, b2p, n_par=1)
        return y[:B, :out_layer]

    partials = fused_mlp(xp, w1t, b1p, w2p, b2p, n_par=n_par,
                         core_parallel=core_parallel)        # (n_par, Bp, OutP)
    y = partials.sum(axis=0) + b2p                           # b2 exactly once
    # relu(fc2(relu(fc1 x))) followed by another relu -> single relu suffices
    return jnp.maximum(y, 0.0)[:B, :out_layer]


if __name__ == "__main__":
    in_layer, out_layer, batch = 32, 10, 2

    key = jax.random.PRNGKey(0)
    kx, kp = jax.random.split(key)
    x = jax.random.normal(kx, (batch, in_layer), jnp.float32)
    w1, b1, w2, b2 = init_params(kp, in_layer, out_layer)

    # one-time layout prep (reused across forward calls, not re-done under jit)
    w1t, b1p, w2p, b2p = jax.block_until_ready(prepare_params(w1, b1, w2, b2))

    # Config selection: v7x -> 2-way CORE_PARALLEL HIDDEN split across its two
    # TensorCores; v5e/v6e (single TC) -> single reduction axis with the
    # b2 + ReLU epilogue fused into the kernel. Fall back to the universally
    # safe 1-TC config if the core-parallel lowering is rejected.
    if _num_tensorcores_per_chip() >= 2:
        configs = [(2, True), (1, False)]
    else:
        configs = [(1, False)]

    y, last_err = None, None
    for n_par, core_par in configs:
        try:
            y = neural_net_forward(x, w1t, b1p, w2p, b2p, out_layer=out_layer,
                                   n_par=n_par, core_parallel=core_par)
            y = jax.block_until_ready(y)
            break
        except Exception as e:  # retry with the safe single-core configuration
            last_err, y = e, None
    if y is None:
        raise last_err

    # sanity: correct shape and ReLU non-negativity
    assert y.shape == (batch, out_layer)
    assert bool(jnp.all(y >= 0.0))

    # reference check in plain JAX at full f32 precision. Layer 1 runs with
    # bf16 x/W1 in the kernel (W2/b1/b2 and all accumulation stay f32), which
    # bounds the end-to-end error at a few 1e-4; 5e-3 is a >10-sigma margin.
    h_ref = jnp.maximum(
        jnp.dot(x, w1.T, precision=lax.Precision.HIGHEST) + b1, 0.0)
    ref = jnp.maximum(
        jnp.dot(h_ref, w2.T, precision=lax.Precision.HIGHEST) + b2, 0.0)
    assert bool(jnp.allclose(y, ref, atol=5e-3, rtol=5e-3))

    print("KERNEL_OK")
</pallas_src>

<mosaic_0001>
module attributes {stable_mosaic.version = 11 : i64} {
  func.func @_fused_mlp_kernel(%arg0: i32, %arg1: memref<8x32xbf16, #tpu.memory_space<vmem>>, %arg2: memref<32x12544xbf16, #tpu.memory_space<vmem>>, %arg3: memref<1x12544xf32, #tpu.memory_space<vmem>>, %arg4: memref<16x12544xf32, #tpu.memory_space<vmem>>, %arg5: memref<1x16xf32, #tpu.memory_space<vmem>>, %arg6: memref<8x16xf32, #tpu.memory_space<vmem>>) attributes {dimension_semantics = [#tpu.dimension_semantics<arbitrary>], iteration_bounds = array<i64: 4>, scalar_prefetch = 0 : i64, scratch_operands = 0 : i64, tpu.core_type = #tpu.core_type<tc>, window_params = [{pipeline_mode = #tpu.pipeline_mode<synchronous>, transform_indices = @transform_0, window_bounds = array<i64: 8, 32>}, {transform_indices = @transform_1, window_bounds = array<i64: 32, 12544>}, {transform_indices = @transform_2, window_bounds = array<i64: 1, 12544>}, {transform_indices = @transform_3, window_bounds = array<i64: 16, 12544>}, {pipeline_mode = #tpu.pipeline_mode<synchronous>, transform_indices = @transform_4, window_bounds = array<i64: 1, 16>}, {pipeline_mode = #tpu.pipeline_mode<synchronous>, transform_indices = @transform_5, window_bounds = array<i64: 8, 16>}]} {
    %c0_i32 = arith.constant 0 : i32
    %0 = arith.cmpi eq, %arg0, %c0_i32 : i32
    %1 = arith.extui %0 : i1 to i32
    %c0_i32_0 = arith.constant 0 : i32
    %2 = arith.cmpi ne, %1, %c0_i32_0 : i32
    scf.if %2 {
      %cst_15 = arith.constant 0.000000e+00 : f32
      %19 = vector.broadcast %cst_15 : f32 to vector<8x16xf32>
      %c0_16 = arith.constant 0 : index
      %c0_17 = arith.constant 0 : index
      %20 = vector.load %arg6[%c0_16, %c0_17] : memref<8x16xf32, #tpu.memory_space<vmem>>, vector<8x16xf32>
      tpu.vector_store %arg6[%c0_16, %c0_17], %19 {strides = array<i32>} : memref<8x16xf32, #tpu.memory_space<vmem>>, vector<8x16xf32>,
    } else {
    }
    %c0 = arith.constant 0 : index
    %c0_1 = arith.constant 0 : index
    %3 = vector.load %arg1[%c0, %c0_1] : memref<8x32xbf16, #tpu.memory_space<vmem>>, vector<8x32xbf16>
    %c0_2 = arith.constant 0 : index
    %c0_3 = arith.constant 0 : index
    %4 = vector.load %arg2[%c0_2, %c0_3] : memref<32x12544xbf16, #tpu.memory_space<vmem>>, vector<32x12544xbf16>
    %cst = arith.constant dense<0.000000e+00> : vector<8x12544xf32>
    %5 = tpu.matmul %3, %4, %cst {dimension_numbers = #tpu.dot_dimension_numbers<[1], [0], [0], [1], [0, 0, 1, 1], [], []>} : vector<8x32xbf16>, vector<32x12544xbf16>, vector<8x12544xf32> -> vector<8x12544xf32>
    %c0_4 = arith.constant 0 : index
    %c0_5 = arith.constant 0 : index
    %6 = vector.load %arg3[%c0_4, %c0_5] : memref<1x12544xf32, #tpu.memory_space<vmem>>, vector<1x12544xf32>
    %7 = vector.broadcast %6 : vector<1x12544xf32> to vector<8x12544xf32>
    %8 = arith.addf %5, %7 : vector<8x12544xf32>
    %cst_6 = arith.constant 0.000000e+00 : f32
    %9 = vector.broadcast %cst_6 : f32 to vector<8x12544xf32>
    %10 = arith.maximumf %8, %9 : vector<8x12544xf32>
    %c0_7 = arith.constant 0 : index
    %c0_8 = arith.constant 0 : index
    %11 = vector.load %arg6[%c0_7, %c0_8] : memref<8x16xf32, #tpu.memory_space<vmem>>, vector<8x16xf32>
    %c0_9 = arith.constant 0 : index
    %c0_10 = arith.constant 0 : index
    %12 = vector.load %arg4[%c0_9, %c0_10] : memref<16x12544xf32, #tpu.memory_space<vmem>>, vector<16x12544xf32>
    %cst_11 = arith.constant dense<0.000000e+00> : vector<8x16xf32>
    %13 = tpu.matmul %10, %12, %cst_11 {dimension_numbers = #tpu.dot_dimension_numbers<[1], [1], [0], [0], [0, 0, 1, 0], [], []>} : vector<8x12544xf32>, vector<16x12544xf32>, vector<8x16xf32> -> vector<8x16xf32>
    %14 = arith.addf %11, %13 : vector<8x16xf32>
    %c0_12 = arith.constant 0 : index
    %c0_13 = arith.constant 0 : index
    %15 = vector.load %arg6[%c0_12, %c0_13] : memref<8x16xf32, #tpu.memory_space<vmem>>, vector<8x16xf32>
    tpu.vector_store %arg6[%c0_12, %c0_13], %14 {strides = array<i32>} : memref<8x16xf32, #tpu.memory_space<vmem>>, vector<8x16xf32>,
    %c3_i32 = arith.constant 3 : i32
    %16 = arith.cmpi eq, %arg0, %c3_i32 : i32
    %17 = arith.extui %16 : i1 to i32
    %c0_i32_14 = arith.constant 0 : i32
    %18 = arith.cmpi ne, %17, %c0_i32_14 : i32
    scf.if %18 {
      %c0_15 = arith.constant 0 : index
      %c0_16 = arith.constant 0 : index
      %19 = vector.load %arg6[%c0_15, %c0_16] : memref<8x16xf32, #tpu.memory_space<vmem>>, vector<8x16xf32>
      %c0_17 = arith.constant 0 : index
      %c0_18 = arith.constant 0 : index
      %20 = vector.load %arg5[%c0_17, %c0_18] : memref<1x16xf32, #tpu.memory_space<vmem>>, vector<1x16xf32>
      %21 = vector.broadcast %20 : vector<1x16xf32> to vector<8x16xf32>
      %22 = arith.addf %19, %21 : vector<8x16xf32>
      %cst_19 = arith.constant 0.000000e+00 : f32
      %23 = vector.broadcast %cst_19 : f32 to vector<8x16xf32>
      %24 = arith.maximumf %22, %23 : vector<8x16xf32>
      %c0_20 = arith.constant 0 : index
      %c0_21 = arith.constant 0 : index
      %25 = vector.load %arg6[%c0_20, %c0_21] : memref<8x16xf32, #tpu.memory_space<vmem>>, vector<8x16xf32>
      tpu.vector_store %arg6[%c0_20, %c0_21], %24 {strides = array<i32>} : memref<8x16xf32, #tpu.memory_space<vmem>>, vector<8x16xf32>,
    } else {
    }
    return
  }
  func.func @transform_0(%arg0: i32) -> (i32, i32) {
    %c0_i32 = arith.constant 0 : i32
    %c0_i32_0 = arith.constant 0 : i32
    %c0_i32_1 = arith.constant 0 : i32
    return %c0_i32, %c0_i32_0 : i32, i32
  }
  func.func @transform_1(%arg0: i32) -> (i32, i32) {
    %c0_i32 = arith.constant 0 : i32
    %c0_i32_0 = arith.constant 0 : i32
    return %c0_i32, %arg0 : i32, i32
  }
  func.func @transform_2(%arg0: i32) -> (i32, i32) {
    %c0_i32 = arith.constant 0 : i32
    %c0_i32_0 = arith.constant 0 : i32
    return %c0_i32, %arg0 : i32, i32
  }
  func.func @transform_3(%arg0: i32) -> (i32, i32) {
    %c0_i32 = arith.constant 0 : i32
    %c0_i32_0 = arith.constant 0 : i32
    return %c0_i32, %arg0 : i32, i32
  }
  func.func @transform_4(%arg0: i32) -> (i32, i32) {
    %c0_i32 = arith.constant 0 : i32
    %c0_i32_0 = arith.constant 0 : i32
    %c0_i32_1 = arith.constant 0 : i32
    return %c0_i32, %c0_i32_0 : i32, i32
  }
  func.func @transform_5(%arg0: i32) -> (i32, i32) {
    %c0_i32 = arith.constant 0 : i32
    %c0_i32_0 = arith.constant 0 : i32
    %c0_i32_1 = arith.constant 0 : i32
    return %c0_i32, %c0_i32_0 : i32, i32
  }
}

</mosaic_0001>

<bundles_post_ra>
// kernel: neural_net_forward.1
= control target key start
LH: loop header
LB: loop body
LE: loop exit
PB: predicated region body
PF: predicated region fallthrough
CT: control target
= control target key end

     0   :  { %10 = vsyncpa [#allocation3], 0  ;;  %s9720_s0 = inlined_call_operand.vmem [shape: bf16[8,32], index: 0, kind: input, shape index: {}]   ;;  %s9721_s1 = inlined_call_operand.hbm [shape: bf16[32,50176], index: 1, kind: input, shape index: {}]   ;;  %s9722_s2 = inlined_call_operand.hbm [shape: f32[1,50176], index: 2, kind: input, shape index: {}]   ;;  %s9723_s3 = inlined_call_operand.hbm [shape: f32[16,50176], index: 3, kind: input, shape index: {}]   ;;  %s9724_s4 = inlined_call_operand.hbm [shape: f32[1,16], index: 4, kind: input, shape index: {}]   ;;  %s9725_s5 = inlined_call_operand.vmem [shape: f32[8,16], index: 5, kind: output, shape index: {}]  }
   0x1   :  { %12 = vsyncpa [#allocation3 + $0x1], 0 }
   0x2   :  { %13 = vsyncpa [#allocation5], 0 }
   0x3   :  { %15 = vsyncpa [#allocation5 + $0x1], 0 }
   0x4   :  { %16 = vsyncpa [#allocation8], 0  ;;  %s8695_s18 = smov 0   ;;  %s8697_s19 = smov 0  }
   0x5   :  { %s8699_s20 = smov 0   ;;  %s8701_s21 = smov 0  }
   0x6 LB: > { %s8716_s22 = sadd.s32 1, %s8651_s21   ;;  %s50_s23 = sadd.s32 1, %s8647_s20  ;;  %s8651_s21 = sphi %s8701_s21, %s9745_s21   ;;  %s8647_s20 = sphi %s8699_s20, %s9744_s20   ;;  %s8643_s19 = sphi %s8697_s19, %s9743_s19   ;;  %s8639_s18 = sphi %s8695_s18, %s9742_s18  }
   0x7   : > { %s47_s24 = ssub.s32 %s8651_s21, %s8716_s22  ;;  %p57_p0 = scmp.ne.s32.totalorder %s8647_s20, %s8643_s19 }
   0x8   : > { %p48_p1 = scmp.eq.s32.totalorder %s47_s24, 0  ;;  %p58_p2 = scmp.eq.s32.totalorder %s8651_s21, 0 }
   0x9   : > { %p8161_p3 = scmp.lt.s32.totalorder %s8651_s21, 4  ;;  %s8729_s26 = sand.u32 1, %s8647_s20  }
   0xa   : > { %s8726_s25 = scalar_select %p48_p1, %s8647_s20, %s50_s23  }
   0xb   : > { %p59_p4 = por %p58_p2, %p57_p0  ;;  %s8131_s27 = smul.u32 1568, %s8729_s26 }
   0xc   : > { %s216_s29 = sand.u32 1, %s8651_s21   ;;  %s8132_s7 = smul.u32 98, %s8729_s26 }
   0xd   : > { %p8732_p5 = pnand %p8161_p3, %p59_p4  ;;  %s199_s30 = scalar_lea.vmem [#allocation2], %s8131_s27 }
   0xe   : > { %s206_s6 = sshll.u32 %s199_s30, 4  ;;  %s8129_s8 = smul.u32 1568, %s8651_s21  ;;  %s8737_s6 = int_to_ptr.vmem [resolvable:$true] %s206_s6 }
   0xf   : > { %s239_s9 = scalar_lea.vmem [#allocation6], %s8131_s27  ;;  %s220_s14 = scalar_lea.vmem [#allocation4], %s8132_s7 }
  0x10   : > { %s246_s10 = sshll.u32 %s239_s9, 4  ;;  %s8744_s13 = scalar_lea.hbm %s9722_s2, %s8129_s8  ;;  %s8746_s10 = int_to_ptr.vmem [resolvable:$true] %s246_s10 }
  0x11   : > { %s228_s15 = sshll.u32 %s220_s14, 4  ;;  %s8748_s16 = scalar_lea.sflag [#allocation5], %s216_s29  ;;  %s229_s15 = int_to_ptr.vmem [resolvable:$true] %s228_s15 }
  0x12   : > { %s8499_s17 = scalar_lea.hbm %s8744_s13, 1568  ;;  %p8754_p7 = pneg %p8732_p5 }
  0x13   : > { %p8500_p6 = scmp.ne.s32.totalorder %s8744_s13, %s8499_s17  ;;  %s8504_s30 = scalar_lea.hbm %s9722_s2, 6272 }
  0x14   : > { %p8505_p10 = scmp.lt.s32.totalorder %s8744_s13, %s9722_s2  ;;  %p8506_p11 = scmp.lt.s32.totalorder %s8504_s30, %s8499_s17 }
  0x15   : > { %p8502_p8 = pnand %p8754_p7, %p8500_p6 }
  0x16   : > { %p8507_p12 = por %p8506_p11, %p8505_p10 }
  0x17   : > { %p8503_p9 = pneg %p8502_p8 }
  0x19   : > { %p8508_p13 = pnand %p8507_p12, %p8503_p9 }
  0x1b   : > { %8511 = shalt.err (!%p8508_p13)
}
  0x1c   : > { %s8512_s29 = scalar_lea.vmem %s229_s15, 1568  ;;  %s8653_s9 = smov [#allocation4]  }
  0x1d   : > { %p8513_p0 = scmp.ne.s32.totalorder %s229_s15, %s8512_s29  ;;  %s8517_s11 = sshll.u32 %s8653_s9, 4  ;;  %s8518_s11 = int_to_ptr.vmem [resolvable:$false] %s8517_s11 }
  0x1e   : > { %s8519_s12 = scalar_lea.vmem %s8518_s11, 3136  ;;  %p8520_p3 = scmp.lt.s32.totalorder %s229_s15, %s8518_s11 }
  0x1f   : > { %p8515_p1 = pnand %p8513_p0, %p8754_p7  ;;  %p8521_p4 = scmp.lt.s32.totalorder %s8519_s12, %s8512_s29 }
  0x21   : > { %p8516_p2 = pneg %p8515_p1  ;;  %p8522_p6 = por %p8521_p4, %p8520_p3 }
  0x23   : > { %p8523_p8 = pnand %p8522_p6, %p8516_p2 }
  0x25   : > { %8526 = shalt.err (!%p8523_p8)
}
  0x26   : > { %8156 = dma.hbm_to_vmem [thread:$0]  (!%p8732_p5), %s8744_s13, 1568, %s229_s15, %s8748_s16  }
  0x27   : > { %s8774_s14 = sadd.s32 4294967295, %s8651_s21   ;;  %p63_p10 = scmp.ne.s32.totalorder %s8643_s19, %s8639_s18 }
  0x28   : > { %p9726_p9 = scmp.eq.s32.totalorder %s8774_s14, 0  ;;  %p7870_p11 = scmp.ge.s32.totalorder %s8651_s21, 1 }
  0x29   : > { %p168_p12 = scmp.lt.s32.totalorder %s8651_s21, 5  ;;  %s8654_s15 = smov [#allocation7]  }
  0x2a   : > { %p8784_p0 = por %p9726_p9, %p63_p10  ;;  %s184_s24 = sshll.u32 %s8654_s15, 4  ;;  %s8792_s24 = int_to_ptr.vmem [resolvable:$true] %s184_s24 }
  0x2b   : > { %p8788_p1 = pnand %p7870_p11, %p168_p12  ;;  %s8128_s27 = smul.u32 6272, %s8651_s21 }
  0x2c   : > { %s9732_s17 = scalar_select %p8784_p0, 1, 0 }
  0x2d   : > { %s9733_s13 = scalar_select %p8788_p1, 1, 0 }
  0x2e   : > { %p8146_p2 = pneg %p8788_p1  ;;  %s8800_s7 = scalar_lea.hbm %s9721_s1, %s8128_s27 }
  0x2f   : > { %s8527_s9 = scalar_lea.hbm %s8800_s7, 25088  ;;  %s8532_s15 = scalar_lea.hbm %s9721_s1, 100352 }
  0x30   : > { %p8804_p3 = pnand %p8146_p2, %p9726_p9  ;;  %p8528_p4 = scmp.ne.s32.totalorder %s8800_s7, %s8527_s9 }
  0x31   : > { %p8533_p10 = scmp.lt.s32.totalorder %s8800_s7, %s9721_s1  ;;  %p8534_p11 = scmp.lt.s32.totalorder %s8532_s15, %s8527_s9 }
  0x32   : > { %s9734_s8 = scalar_select %p8804_p3, 1, 0 }
  0x33   : > { %p8530_p6 = pnand %p8528_p4, %p8754_p7  ;;  %p8535_p12 = por %p8534_p11, %p8533_p10 }
  0x35   : > { %p8531_p8 = pneg %p8530_p6 }
  0x37   : > { %p8536_p2 = pnand %p8535_p12, %p8531_p8 }
  0x39   : > { %8539 = shalt.err (!%p8536_p2)
}
  0x3a   : > { %s8540_s30 = scalar_lea.vmem %s8737_s6, 25088  ;;  %s8655_s29 = smov [#allocation2]  }
  0x3b   : > { %p8541_p13 = scmp.ne.s32.totalorder %s8737_s6, %s8540_s30  ;;  %s8545_s11 = sshll.u32 %s8655_s29, 4  ;;  %s8546_s11 = int_to_ptr.vmem [resolvable:$false] %s8545_s11 }
  0x3c   : > { %s8547_s12 = scalar_lea.vmem %s8546_s11, 50176  ;;  %p8548_p9 = scmp.lt.s32.totalorder %s8737_s6, %s8546_s11 }
  0x3d   : > { %p8543_p4 = pnand %p8541_p13, %p8754_p7  ;;  %p8549_p0 = scmp.lt.s32.totalorder %s8547_s12, %s8540_s30 }
  0x3f   : > { %p8544_p6 = pneg %p8543_p4  ;;  %p8550_p1 = por %p8549_p0, %p8548_p9 }
  0x41   : > { %p8551_p3 = pnand %p8550_p1, %p8544_p6 }
  0x43   : > { %8554 = shalt.err (!%p8551_p3)
}
  0x44   : > { %s8656_s9 = smov 25088   ;;  %s8657_s15 = smov 6272  }
  0x45   : > { %s8658_s29 = smov 392   ;;  %s9735_s27 = scalar_lea.sflag [#allocation3], %s8729_s26 }
  0x46   : > { %8153 = dma.hbm_to_vmem [thread:$0]  (!%p8732_p5), %s8800_s7, 25088, %s8737_s6, %s9735_s27, %s8656_s9, %s8657_s15, %s8658_s29  }
  0x47   : > { %s8130_s18 = smul.u32 12544, %s8651_s21  ;;  %p9736_p9 = scmp.ne.s32.totalorder %s9734_s8, 0 }
  0x48   : > { %s8566_s30 = scalar_lea.vmem %s8792_s24, 16  ;;  %s8573_s11 = scalar_lea.vmem %s8792_s24, 32 }
  0x49   : > { %p8557_p13 = pneg %p9736_p9  ;;  %p8567_p0 = scmp.ne.s32.totalorder %s8792_s24, %s8566_s30 }
  0x4a   : > { %p8574_p8 = scmp.lt.s32.totalorder %s8792_s24, %s8792_s24  ;;  %p8575_p10 = scmp.lt.s32.totalorder %s8573_s11, %s8566_s30 }
  0x4b   : > { %p8569_p1 = pnand %p8567_p0, %p8557_p13 }
  0x4c   : > { %p8576_p11 = por %p8575_p10, %p8574_p8 }
  0x4d   : > { %p8570_p3 = pneg %p8569_p1 }
  0x4f   : > { %p8577_p12 = pnand %p8576_p11, %p8570_p3 }
  0x51   : > { %8580 = shalt.err (!%p8577_p12)
}
  0x52   : > { %8149 = dma.hbm_to_vmem [thread:$0]  (!%p9736_p9), %s9724_s4, 16, %s8792_s24, [#allocation8]  }
  0x53   : > { %s8848_s7 = scalar_lea.hbm %s9723_s3, %s8130_s18  ;;  %s8586_s29 = scalar_lea.hbm %s9723_s3, 100352 }
  0x54   : > { %s8581_s9 = scalar_lea.hbm %s8848_s7, 25088  ;;  %p8587_p9 = scmp.lt.s32.totalorder %s8848_s7, %s9723_s3 }
  0x55   : > { %p8582_p2 = scmp.ne.s32.totalorder %s8848_s7, %s8581_s9  ;;  %p8588_p13 = scmp.lt.s32.totalorder %s8586_s29, %s8581_s9 }
  0x57   : > { %p8584_p4 = pnand %p8582_p2, %p8754_p7  ;;  %p8589_p0 = por %p8588_p13, %p8587_p9 }
  0x59   : > { %p8585_p6 = pneg %p8584_p4 }
  0x5b   : > { %p8590_p1 = pnand %p8589_p0, %p8585_p6 }
  0x5d   : > { %8593 = shalt.err (!%p8590_p1)
}
  0x5e   : > { %s8594_s24 = scalar_lea.vmem %s8746_s10, 25088  ;;  %s8659_s18 = smov [#allocation6]  }
  0x5f   : > { %p8595_p3 = scmp.ne.s32.totalorder %s8746_s10, %s8594_s24  ;;  %s8599_s11 = sshll.u32 %s8659_s18, 4  ;;  %s8600_s11 = int_to_ptr.vmem [resolvable:$false] %s8599_s11 }
  0x60   : > { %s8601_s12 = scalar_lea.vmem %s8600_s11, 50176  ;;  %p8602_p11 = scmp.lt.s32.totalorder %s8746_s10, %s8600_s11 }
  0x61   : > { %p8597_p8 = pnand %p8595_p3, %p8754_p7  ;;  %p8603_p12 = scmp.lt.s32.totalorder %s8601_s12, %s8594_s24 }
  0x63   : > { %p8598_p10 = pneg %p8597_p8  ;;  %p8604_p2 = por %p8603_p12, %p8602_p11 }
  0x65   : > { %p8605_p4 = pnand %p8604_p2, %p8598_p10 }
  0x67   : > { %8608 = shalt.err (!%p8605_p4)
}
  0x68   : > { %s8660_s26 = smov 50176   ;;  %s8661_s21 = smov 12544  }
  0x69   : > { %s8662_s6 = smov 784   ;;  %p9737_p7 = scmp.ne.s32.totalorder %s9733_s13, 0 }
  0x6a   : > { %8159 = dma.hbm_to_vmem [thread:$0]  (!%p8732_p5), %s8848_s7, 25088, %s8746_s10, %s8748_s16, %s8660_s26, %s8661_s21, %s8662_s6  }
  0x6b   : > { %258 = sbr.rel (%p9737_p7) target bundleno = 741 (0x2e5), region = 40  ;;  %s260_s23 = sand.u32 (!%p9737_p7), 1, %s8643_s19  }
  0x6c   : > { %s8134_s9 = smul.u32 (!%p9737_p7), 1568, %s260_s23  ;;  %s261_s8 = scalar_lea.sflag (!%p9737_p7), [#allocation3], %s260_s23 }
  0x6d   : > { %p9738_p6 = scmp.ne.s32.totalorder (!%p9737_p7), %s9732_s17, 0 }
  0x6e   : > { %s8874_s15 = scalar_lea.vmem (!%p9737_p7), [#allocation2], %s8134_s9 }
  0x70   : > { %8626 = dma.done.wait (%p9738_p6), %s261_s8, 25088  }
  0x71   : > { %8628 = vsyncadd (%p9738_p6), %s261_s8, 4294942208  ;;  %s269_s29 = sand.u32 1, %s8774_s14   ;;  %s8135_s28 = smul.u32 98, %s260_s23 }
  0x72   : > { %s270_s10 = scalar_lea.sflag [#allocation5], %s269_s29 }
  0x73   : > { %s8881_s16 = scalar_lea.vmem [#allocation4], %s8135_s28 }
  0x74   : > { %8630 = dma.done.wait (%p9738_p6), %s270_s10, 26656  }
  0x75   : > { %8632 = vsyncadd (%p9738_p6), %s270_s10, 4294940640  ;;  %s8887_s13 = scalar_lea.vmem [#allocation6], %s8134_s9  ;;  %p9739_p5 = scmp.eq.s32.totalorder %s8774_s14, 0 }
  0x77   : > { %8634 = dma.done.wait (%p9739_p5), [#allocation8], 16   ;;  %p9740_p9 = pmov %p9739_p5 }
  0x78   : > { %p9741_p13 = scmp.ne.s32.totalorder %s8774_s14, 0 }
  0x79   : > { %8636 = vsyncadd (%p9740_p9), [#allocation8], 4294967280 }
  0x7a   : > { %325 = sbr.rel (%p9741_p13) target bundleno = 129 (0x81), region = 60 }
  0x7f   : > { %vm326_vm0 = vcmask 130048   ;;  %v8663_v0 = vmov 0.0  }
  0x80   : > { %327 = vst.msk [vmem:[%s9725_s5] sm:$0xff] %vm326_vm0, %v8663_v0 }
  0x81 PF: > { %v8204_v1 = vld [vmem:[%s8874_s15 + $0x314] ss:$392 sps:$4 sm:$0xff]   ;;  %v8664_v3 = vmov 0   ;;  %v8208_v4 = vld [vmem:[%s8874_s15 + $0x310] ss:$392 sps:$4 sm:$0xff]   ;;  %vm2021_vm1 = vcmask 261120  }
  0x82   : > { %v8206_v2 = vld [vmem:[%s8874_s15 + $0x31c] ss:$392 sps:$4 sm:$0xff]   ;;  %2057 = vmatprep.mubr.bf16.mxu0 %v8664_v3  ;;  %2098 = vmatprep.mubr.bf16.mxu1 %v8664_v3  ;;  %v8209_v5 = vld [vmem:[%s8874_s15 + $0x318] ss:$392 sps:$4 sm:$0xff]   ;;  %v8212_v7 = vld [vmem:[%s8874_s15 + $0xc] ss:$392 sps:$4 sm:$0xff]  }
  0x83   : > { %2037 = vmatprep.subr.bf16.mxu0 %v8204_v1  ;;  %2078 = vmatprep.subr.bf16.mxu1 %v8206_v2  ;;  %v8210_v6 = vld [vmem:[%s8874_s15 + $0x4] ss:$392 sps:$4 sm:$0xff]   ;;  %v8214_v8 = vld [vmem:[%s8874_s15] ss:$392 sps:$4 sm:$0xff]   ;;  %v8224_v15 = vld [vmem:[%s8874_s15 + $0x14] ss:$392 sps:$4 sm:$0xff]  }
  0x84   : > { %2038 = vmatpush1.bf16.msra.mxu0 %v8208_v4  ;;  %2079 = vmatpush1.bf16.msra.mxu1 %v8209_v5  ;;  %v8215_v9 = vld [vmem:[%s8874_s15 + $0x8] ss:$392 sps:$4 sm:$0xff]   ;;  %v8911_v10 = vld [vmem:[%s9720_s0] sm:$0xf]  ;;  %v8218_v12 = vld [vmem:[%s8874_s15 + $0x324] ss:$392 sps:$4 sm:$0xff]  }
  0x85   : > { %2039 = vmatprep.subr.bf16.mxu0 %v8210_v6  ;;  %2080 = vmatprep.subr.bf16.mxu1 %v8212_v7  ;;  %v8216_v11 = vld [vmem:[%s8874_s15 + $0x320] ss:$392 sps:$4 sm:$0xff]   ;;  %v8221_v14 = vld [vmem:[%s8874_s15 + $0x32c] ss:$392 sps:$4 sm:$0xff]   ;;  %v8227_v16 = vld [vmem:[%s8874_s15 + $0x1c] ss:$392 sps:$4 sm:$0xff]  }
  0x86   : > { %v8219_v13 = vld [vmem:[%s8874_s15 + $0x328] ss:$392 sps:$4 sm:$0xff]   ;;  %v8225_v18 = vld [vmem:[%s8874_s15 + $0x18] ss:$392 sps:$4 sm:$0xff]   ;;  %v8230_v19 = vld [vmem:[%s8874_s15 + $0x334] ss:$392 sps:$4 sm:$0xff]  }
  0x87   : > { %v8222_v17 = vld [vmem:[%s8874_s15 + $0x10] ss:$392 sps:$4 sm:$0xff]   ;;  %v8233_v20 = vld [vmem:[%s8874_s15 + $0x33c] ss:$392 sps:$4 sm:$0xff]   ;;  %v8239_v24 = vld [vmem:[%s8874_s15 + $0x2c] ss:$392 sps:$4 sm:$0xff]  }
  0x88   : > { %2040 = vmatpush1.bf16.msra.mxu0 %v8214_v8  ;;  %2081 = vmatpush1.bf16.msra.mxu1 %v8215_v9  ;;  %v8228_v21 = vld [vmem:[%s8874_s15 + $0x330] ss:$392 sps:$4 sm:$0xff]   ;;  %v8236_v23 = vld [vmem:[%s8874_s15 + $0x24] ss:$392 sps:$4 sm:$0xff]   ;;  %v8234_v25 = vld [vmem:[%s8874_s15 + $0x20] ss:$392 sps:$4 sm:$0xff]  }
  0x89   : > { %2119 = vmatprep.subr.bf16.mxu0 %v8218_v12  ;;  %2160 = vmatprep.subr.bf16.mxu1 %v8221_v14  ;;  %v8231_v22 = vld [vmem:[%s8874_s15 + $0x338] ss:$392 sps:$4 sm:$0xff]   ;;  %v8237_v26 = vld [vmem:[%s8874_s15 + $0x28] ss:$392 sps:$4 sm:$0xff]   ;;  %v8242_v27 = vld [vmem:[%s8874_s15 + $0x344] ss:$392 sps:$4 sm:$0xff]  }
  0x8a   : > { %v8245_v28 = vld [vmem:[%s8874_s15 + $0x34c] ss:$392 sps:$4 sm:$0xff]   ;;  %v8240_v29 = vld [vmem:[%s8874_s15 + $0x340] ss:$392 sps:$4 sm:$0xff]   ;;  %v8251_v32 = vld [vmem:[%s8874_s15 + $0x3c] ss:$392 sps:$4 sm:$0xff]  }
  0x8b   : > { %8075 = vmatmul.mubr.msk.bf16.vlgmr.msra.gmra.mxu0 %vm2021_vm1, %v8911_v10  ;;  %8076 = vmatmul.mubr.msk.bf16.vlgmr.msra.gmra.mxu1 %vm2021_vm1, %v8911_v10  ;;  %v8243_v30 = vld [vmem:[%s8874_s15 + $0x348] ss:$392 sps:$4 sm:$0xff]   ;;  %v8248_v31 = vld [vmem:[%s8874_s15 + $0x34] ss:$392 sps:$4 sm:$0xff]   ;;  %v8249_v34 = vld [vmem:[%s8874_s15 + $0x38] ss:$392 sps:$4 sm:$0xff]  }
  0x8c   : > { %2120 = vmatpush1.bf16.msra.mxu0 %v8216_v11  ;;  %2161 = vmatpush1.bf16.msra.mxu1 %v8219_v13  ;;  %v8246_v33 = vld [vmem:[%s8874_s15 + $0x30] ss:$392 sps:$4 sm:$0xff]   ;;  %v8254_v35 = vld [vmem:[%s8874_s15 + $0x354] ss:$392 sps:$4 sm:$0xff]   ;;  %v8260_v39 = vld [vmem:[%s8874_s15 + $0x44] ss:$392 sps:$4 sm:$0xff]  }
  0x8d   : > { %2121 = vmatprep.subr.bf16.mxu0 %v8224_v15  ;;  %2162 = vmatprep.subr.bf16.mxu1 %v8227_v16  ;;  %v8257_v36 = vld [vmem:[%s8874_s15 + $0x35c] ss:$392 sps:$4 sm:$0xff]   ;;  %v8252_v37 = vld [vmem:[%s8874_s15 + $0x350] ss:$392 sps:$4 sm:$0xff]   ;;  %v8263_v40 = vld [vmem:[%s8874_s15 + $0x4c] ss:$392 sps:$4 sm:$0xff]  }
  0x8e   : > { %2139 = vmatprep.mubr.bf16.mxu0 %v8664_v3  ;;  %2180 = vmatprep.mubr.bf16.mxu1 %v8664_v3  ;;  %v8255_v38 = vld [vmem:[%s8874_s15 + $0x358] ss:$392 sps:$4 sm:$0xff]   ;;  %v8261_v42 = vld [vmem:[%s8874_s15 + $0x48] ss:$392 sps:$4 sm:$0xff]   ;;  %v8266_v43 = vld [vmem:[%s8874_s15 + $0x364] ss:$392 sps:$4 sm:$0xff]  }
  0x8f   : > { %v8258_v41 = vld [vmem:[%s8874_s15 + $0x40] ss:$392 sps:$4 sm:$0xff]   ;;  %v8269_v44 = vld [vmem:[%s8874_s15 + $0x36c] ss:$392 sps:$4 sm:$0xff]   ;;  %v8275_v48 = vld [vmem:[%s8874_s15 + $0x5c] ss:$392 sps:$4 sm:$0xff]  }
  0x90   : > { %2122 = vmatpush1.bf16.msra.mxu0 %v8222_v17  ;;  %2163 = vmatpush1.bf16.msra.mxu1 %v8225_v18  ;;  %v8264_v45 = vld [vmem:[%s8874_s15 + $0x360] ss:$392 sps:$4 sm:$0xff]   ;;  %v8272_v47 = vld [vmem:[%s8874_s15 + $0x54] ss:$392 sps:$4 sm:$0xff]   ;;  %v8270_v49 = vld [vmem:[%s8874_s15 + $0x50] ss:$392 sps:$4 sm:$0xff]  }
  0x91   : > { %2201 = vmatprep.subr.bf16.mxu0 %v8230_v19  ;;  %2242 = vmatprep.subr.bf16.mxu1 %v8233_v20  ;;  %v8267_v46 = vld [vmem:[%s8874_s15 + $0x368] ss:$392 sps:$4 sm:$0xff]   ;;  %v8273_v50 = vld [vmem:[%s8874_s15 + $0x58] ss:$392 sps:$4 sm:$0xff]   ;;  %v8278_v51 = vld [vmem:[%s8874_s15 + $0x374] ss:$392 sps:$4 sm:$0xff]  }
  0x92   : > { %v8281_v52 = vld [vmem:[%s8874_s15 + $0x37c] ss:$392 sps:$4 sm:$0xff]   ;;  %v8276_v53 = vld [vmem:[%s8874_s15 + $0x370] ss:$392 sps:$4 sm:$0xff]   ;;  %v8287_v56 = vld [vmem:[%s8874_s15 + $0x6c] ss:$392 sps:$4 sm:$0xff]  }
  0x93   : > { %8077 = vmatmul.mubr.msk.bf16.vlgmr.msra.gmra.mxu0 %vm2021_vm1, %v8911_v10  ;;  %8078 = vmatmul.mubr.msk.bf16.vlgmr.msra.gmra.mxu1 %vm2021_vm1, %v8911_v10  ;;  %v8279_v54 = vld [vmem:[%s8874_s15 + $0x378] ss:$392 sps:$4 sm:$0xff]   ;;  %v8284_v55 = vld [vmem:[%s8874_s15 + $0x64] ss:$392 sps:$4 sm:$0xff]   ;;  %v8285_v58 = vld [vmem:[%s8874_s15 + $0x68] ss:$392 sps:$4 sm:$0xff]  }
  0x94   : > { %2202 = vmatpush1.bf16.msra.mxu0 %v8228_v21  ;;  %2243 = vmatpush1.bf16.msra.mxu1 %v8231_v22  ;;  %v8282_v57 = vld [vmem:[%s8874_s15 + $0x60] ss:$392 sps:$4 sm:$0xff]   ;;  %v8290_v59 = vld [vmem:[%s8874_s15 + $0x384] ss:$392 sps:$4 sm:$0xff]   ;;  %v8296_v63 = vld [vmem:[%s8874_s15 + $0x74] ss:$392 sps:$4 sm:$0xff]  }
  0x95   : > { %2203 = vmatprep.subr.bf16.mxu0 %v8236_v23  ;;  %2244 = vmatprep.subr.bf16.mxu1 %v8239_v24  ;;  %v8293_v60 = vld [vmem:[%s8874_s15 + $0x38c] ss:$392 sps:$4 sm:$0xff]   ;;  %v8288_v61 = vld [vmem:[%s8874_s15 + $0x380] ss:$392 sps:$4 sm:$0xff]   ;;  %v8299_v0 = vld [vmem:[%s8874_s15 + $0x7c] ss:$392 sps:$4 sm:$0xff]  }
  0x96   : > { %2221 = vmatprep.mubr.bf16.mxu0 %v8664_v3  ;;  %2262 = vmatprep.mubr.bf16.mxu1 %v8664_v3  ;;  %v8291_v62 = vld [vmem:[%s8874_s15 + $0x388] ss:$392 sps:$4 sm:$0xff]   ;;  %v8297_v2 = vld [vmem:[%s8874_s15 + $0x78] ss:$392 sps:$4 sm:$0xff]   ;;  %v8302_v4 = vld [vmem:[%s8874_s15 + $0x394] ss:$392 sps:$4 sm:$0xff]  }
  0x97   : > { %v8294_v1 = vld [vmem:[%s8874_s15 + $0x70] ss:$392 sps:$4 sm:$0xff]   ;;  %v8305_v5 = vld [vmem:[%s8874_s15 + $0x39c] ss:$392 sps:$4 sm:$0xff]   ;;  %v8311_v9 = vld [vmem:[%s8874_s15 + $0x8c] ss:$392 sps:$4 sm:$0xff]  }
  0x98   : > { %2204 = vmatpush1.bf16.msra.mxu0 %v8234_v25  ;;  %2245 = vmatpush1.bf16.msra.mxu1 %v8237_v26  ;;  %v8300_v6 = vld [vmem:[%s8874_s15 + $0x390] ss:$392 sps:$4 sm:$0xff]   ;;  %v8308_v8 = vld [vmem:[%s8874_s15 + $0x84] ss:$392 sps:$4 sm:$0xff]   ;;  %v8306_v11 = vld [vmem:[%s8874_s15 + $0x80] ss:$392 sps:$4 sm:$0xff]  }
  0x99   : > { %2283 = vmatprep.subr.bf16.mxu0 %v8242_v27  ;;  %2324 = vmatprep.subr.bf16.mxu1 %v8245_v28  ;;  %v8303_v7 = vld [vmem:[%s8874_s15 + $0x398] ss:$392 sps:$4 sm:$0xff]   ;;  %v8309_v12 = vld [vmem:[%s8874_s15 + $0x88] ss:$392 sps:$4 sm:$0xff]   ;;  %v8314_v13 = vld [vmem:[%s8874_s15 + $0x3a4] ss:$392 sps:$4 sm:$0xff]  }
  0x9a   : > { %v8317_v14 = vld [vmem:[%s8874_s15 + $0x3ac] ss:$392 sps:$4 sm:$0xff]   ;;  %v8312_v15 = vld [vmem:[%s8874_s15 + $0x3a0] ss:$392 sps:$4 sm:$0xff]   ;;  %v8323_v18 = vld [vmem:[%s8874_s15 + $0x9c] ss:$392 sps:$4 sm:$0xff]  }
  0x9b   : > { %8079 = vmatmul.mubr.msk.bf16.vlgmr.msra.gmra.mxu0 %vm2021_vm1, %v8911_v10  ;;  %8080 = vmatmul.mubr.msk.bf16.vlgmr.msra.gmra.mxu1 %vm2021_vm1, %v8911_v10  ;;  %v8315_v16 = vld [vmem:[%s8874_s15 + $0x3a8] ss:$392 sps:$4 sm:$0xff]   ;;  %v8320_v17 = vld [vmem:[%s8874_s15 + $0x94] ss:$392 sps:$4 sm:$0xff]   ;;  %v8321_v20 = vld [vmem:[%s8874_s15 + $0x98] ss:$392 sps:$4 sm:$0xff]  }
  0x9c   : > { %2284 = vmatpush1.bf16.msra.mxu0 %v8240_v29  ;;  %2325 = vmatpush1.bf16.msra.mxu1 %v8243_v30  ;;  %v8318_v19 = vld [vmem:[%s8874_s15 + $0x90] ss:$392 sps:$4 sm:$0xff]   ;;  %v8326_v21 = vld [vmem:[%s8874_s15 + $0x3b4] ss:$392 sps:$4 sm:$0xff]   ;;  %v8332_v25 = vld [vmem:[%s8874_s15 + $0xa4] ss:$392 sps:$4 sm:$0xff]  }
  0x9d   : > { %2285 = vmatprep.subr.bf16.mxu0 %v8248_v31  ;;  %2326 = vmatprep.subr.bf16.mxu1 %v8251_v32  ;;  %v8329_v22 = vld [vmem:[%s8874_s15 + $0x3bc] ss:$392 sps:$4 sm:$0xff]   ;;  %v8324_v23 = vld [vmem:[%s8874_s15 + $0x3b0] ss:$392 sps:$4 sm:$0xff]   ;;  %v8335_v26 = vld [vmem:[%s8874_s15 + $0xac] ss:$392 sps:$4 sm:$0xff]  }
  0x9e   : > { %2303 = vmatprep.mubr.bf16.mxu0 %v8664_v3  ;;  %2344 = vmatprep.mubr.bf16.mxu1 %v8664_v3  ;;  %v8327_v24 = vld [vmem:[%s8874_s15 + $0x3b8] ss:$392 sps:$4 sm:$0xff]   ;;  %v8333_v28 = vld [vmem:[%s8874_s15 + $0xa8] ss:$392 sps:$4 sm:$0xff]   ;;  %v8338_v29 = vld [vmem:[%s8874_s15 + $0x3c4] ss:$392 sps:$4 sm:$0xff]  }
  0x9f   : > { %v8330_v27 = vld [vmem:[%s8874_s15 + $0xa0] ss:$392 sps:$4 sm:$0xff]   ;;  %v8341_v30 = vld [vmem:[%s8874_s15 + $0x3cc] ss:$392 sps:$4 sm:$0xff]   ;;  %vm7760_vm2 = vcmask 130048   ;;  %p8124_p0 = scmp.ne.s32.totalorder %s8774_s14, 3 }
  0xa0   : > { %2286 = vmatpush1.bf16.msra.mxu0 %v8246_v33  ;;  %2327 = vmatpush1.bf16.msra.mxu1 %v8249_v34  ;;  %v8336_v31 = vld [vmem:[%s8874_s15 + $0x3c0] ss:$392 sps:$4 sm:$0xff]   ;;  %v8344_v33 = vld [vmem:[%s8874_s15 + $0xb4] ss:$392 sps:$4 sm:$0xff]  }
  0xa1   : > { %2365 = vmatprep.subr.bf16.mxu0 %v8254_v35  ;;  %2406 = vmatprep.subr.bf16.mxu1 %v8257_v36  ;;  %v8339_v32 = vld [vmem:[%s8874_s15 + $0x3c8] ss:$392 sps:$4 sm:$0xff]   ;;  %v8347_v34 = vld [vmem:[%s8874_s15 + $0xbc] ss:$392 sps:$4 sm:$0xff]   ;;  %v8345_v36 = vld [vmem:[%s8874_s15 + $0xb8] ss:$392 sps:$4 sm:$0xff]  }
  0xa2   : > { %v8342_v35 = vld [vmem:[%s8874_s15 + $0xb0] ss:$392 sps:$4 sm:$0xff]  }
  0xa3   : > { %8081 = vmatmul.mubr.msk.bf16.vlgmr.msra.gmra.mxu0 %vm2021_vm1, %v8911_v10  ;;  %8082 = vmatmul.mubr.msk.bf16.vlgmr.msra.gmra.mxu1 %vm2021_vm1, %v8911_v10 }
  0xa4   : > { %2366 = vmatpush1.bf16.msra.mxu0 %v8252_v37  ;;  %2407 = vmatpush1.bf16.msra.mxu1 %v8255_v38  ;;  %v8350_v37 = vld [vmem:[%s8874_s15 + $0x3d4] ss:$392 sps:$4 sm:$0xff]  }
  0xa5   : > { %2367 = vmatprep.subr.bf16.mxu0 %v8260_v39  ;;  %2408 = vmatprep.subr.bf16.mxu1 %v8263_v40  ;;  %v8353_v38 = vld [vmem:[%s8874_s15 + $0x3dc] ss:$392 sps:$4 sm:$0xff]   ;;  %v8348_v39 = vld [vmem:[%s8874_s15 + $0x3d0] ss:$392 sps:$4 sm:$0xff]  }
  0xa6   : > { %2385 = vmatprep.mubr.bf16.mxu0 %v8664_v3  ;;  %2426 = vmatprep.mubr.bf16.mxu1 %v8664_v3  ;;  %v8351_v40 = vld [vmem:[%s8874_s15 + $0x3d8] ss:$392 sps:$4 sm:$0xff]  }
  0xa8   : > { %2368 = vmatpush1.bf16.msra.mxu0 %v8258_v41  ;;  %2409 = vmatpush1.bf16.msra.mxu1 %v8261_v42  ;;  %v8356_v41 = vld [vmem:[%s8874_s15 + $0xc4] ss:$392 sps:$4 sm:$0xff]  }
  0xa9   : > { %2447 = vmatprep.subr.bf16.mxu0 %v8266_v43  ;;  %2488 = vmatprep.subr.bf16.mxu1 %v8269_v44  ;;  %v8359_v42 = vld [vmem:[%s8874_s15 + $0xcc] ss:$392 sps:$4 sm:$0xff]   ;;  %v8354_v43 = vld [vmem:[%s8874_s15 + $0xc0] ss:$392 sps:$4 sm:$0xff]  }
  0xaa   : > { %v8357_v44 = vld [vmem:[%s8874_s15 + $0xc8] ss:$392 sps:$4 sm:$0xff]  }
  0xab   : > { %8083 = vmatmul.mubr.msk.bf16.vlgmr.msra.gmra.mxu0 %vm2021_vm1, %v8911_v10  ;;  %8084 = vmatmul.mubr.msk.bf16.vlgmr.msra.gmra.mxu1 %vm2021_vm1, %v8911_v10 }
  0xac   : > { %2448 = vmatpush1.bf16.msra.mxu0 %v8264_v45  ;;  %2489 = vmatpush1.bf16.msra.mxu1 %v8267_v46  ;;  %v8362_v45 = vld [vmem:[%s8874_s15 + $0x3e4] ss:$392 sps:$4 sm:$0xff]  }
  0xad   : > { %2449 = vmatprep.subr.bf16.mxu0 %v8272_v47  ;;  %2490 = vmatprep.subr.bf16.mxu1 %v8275_v48  ;;  %v8365_v46 = vld [vmem:[%s8874_s15 + $0x3ec] ss:$392 sps:$4 sm:$0xff]   ;;  %v8360_v47 = vld [vmem:[%s8874_s15 + $0x3e0] ss:$392 sps:$4 sm:$0xff]  }
  0xae   : > { %2467 = vmatprep.mubr.bf16.mxu0 %v8664_v3  ;;  %2508 = vmatprep.mubr.bf16.mxu1 %v8664_v3  ;;  %v8363_v48 = vld [vmem:[%s8874_s15 + $0x3e8] ss:$392 sps:$4 sm:$0xff]  }
  0xb0   : > { %2450 = vmatpush1.bf16.msra.mxu0 %v8270_v49  ;;  %2491 = vmatpush1.bf16.msra.mxu1 %v8273_v50  ;;  %v8368_v49 = vld [vmem:[%s8874_s15 + $0xd4] ss:$392 sps:$4 sm:$0xff]  }
  0xb1   : > { %2529 = vmatprep.subr.bf16.mxu0 %v8278_v51  ;;  %2570 = vmatprep.subr.bf16.mxu1 %v8281_v52  ;;  %v8371_v50 = vld [vmem:[%s8874_s15 + $0xdc] ss:$392 sps:$4 sm:$0xff]   ;;  %v8366_v51 = vld [vmem:[%s8874_s15 + $0xd0] ss:$392 sps:$4 sm:$0xff]  }
  0xb2   : > { %v8369_v52 = vld [vmem:[%s8874_s15 + $0xd8] ss:$392 sps:$4 sm:$0xff]  }
  0xb3   : > { %8085 = vmatmul.mubr.msk.bf16.vlgmr.msra.gmra.mxu0 %vm2021_vm1, %v8911_v10  ;;  %8086 = vmatmul.mubr.msk.bf16.vlgmr.msra.gmra.mxu1 %vm2021_vm1, %v8911_v10 }
  0xb4   : > { %2530 = vmatpush1.bf16.msra.mxu0 %v8276_v53  ;;  %2571 = vmatpush1.bf16.msra.mxu1 %v8279_v54  ;;  %v8374_v53 = vld [vmem:[%s8874_s15 + $0x3f4] ss:$392 sps:$4 sm:$0xff]  }
  0xb5   : > { %2531 = vmatprep.subr.bf16.mxu0 %v8284_v55  ;;  %2572 = vmatprep.subr.bf16.mxu1 %v8287_v56  ;;  %v8377_v54 = vld [vmem:[%s8874_s15 + $0x3fc] ss:$392 sps:$4 sm:$0xff]   ;;  %v8372_v55 = vld [vmem:[%s8874_s15 + $0x3f0] ss:$392 sps:$4 sm:$0xff]  }
  0xb6   : > { %2549 = vmatprep.mubr.bf16.mxu0 %v8664_v3  ;;  %2590 = vmatprep.mubr.bf16.mxu1 %v8664_v3  ;;  %v8375_v56 = vld [vmem:[%s8874_s15 + $0x3f8] ss:$392 sps:$4 sm:$0xff]  }
  0xb8   : > { %2532 = vmatpush1.bf16.msra.mxu0 %v8282_v57  ;;  %2573 = vmatpush1.bf16.msra.mxu1 %v8285_v58  ;;  %v8380_v57 = vld [vmem:[%s8874_s15 + $0xe4] ss:$392 sps:$4 sm:$0xff]  }
  0xb9   : > { %2611 = vmatprep.subr.bf16.mxu0 %v8290_v59  ;;  %2652 = vmatprep.subr.bf16.mxu1 %v8293_v60  ;;  %v8383_v58 = vld [vmem:[%s8874_s15 + $0xec] ss:$392 sps:$4 sm:$0xff]   ;;  %v8378_v59 = vld [vmem:[%s8874_s15 + $0xe0] ss:$392 sps:$4 sm:$0xff]  }
  0xba   : > { %v8381_v60 = vld [vmem:[%s8874_s15 + $0xe8] ss:$392 sps:$4 sm:$0xff]  }
  0xbb   : > { %8087 = vmatmul.mubr.msk.bf16.vlgmr.msra.gmra.mxu0 %vm2021_vm1, %v8911_v10  ;;  %8088 = vmatmul.mubr.msk.bf16.vlgmr.msra.gmra.mxu1 %vm2021_vm1, %v8911_v10 }
  0xbc   : > { %2612 = vmatpush1.bf16.msra.mxu0 %v8288_v61  ;;  %2653 = vmatpush1.bf16.msra.mxu1 %v8291_v62  ;;  %v8386_v61 = vld [vmem:[%s8874_s15 + $0x404] ss:$392 sps:$4 sm:$0xff]  }
  0xbd   : > { %2613 = vmatprep.subr.bf16.mxu0 %v8296_v63  ;;  %2654 = vmatprep.subr.bf16.mxu1 %v8299_v0  ;;  %v8389_v62 = vld [vmem:[%s8874_s15 + $0x40c] ss:$392 sps:$4 sm:$0xff]   ;;  %v8384_v63 = vld [vmem:[%s8874_s15 + $0x400] ss:$392 sps:$4 sm:$0xff]  }
  0xbe   : > { %2631 = vmatprep.mubr.bf16.mxu0 %v8664_v3  ;;  %2672 = vmatprep.mubr.bf16.mxu1 %v8664_v3  ;;  %v8387_v0 = vld [vmem:[%s8874_s15 + $0x408] ss:$392 sps:$4 sm:$0xff]  }
  0xc0   : > { %2614 = vmatpush1.bf16.msra.mxu0 %v8294_v1  ;;  %2655 = vmatpush1.bf16.msra.mxu1 %v8297_v2  ;;  %v8392_v1 = vld [vmem:[%s8874_s15 + $0xf4] ss:$392 sps:$4 sm:$0xff]  }
  0xc1   : > { %2693 = vmatprep.subr.bf16.mxu0 %v8302_v4  ;;  %2734 = vmatprep.subr.bf16.mxu1 %v8305_v5  ;;  %v8395_v2 = vld [vmem:[%s8874_s15 + $0xfc] ss:$392 sps:$4 sm:$0xff]   ;;  %v8390_v4 = vld [vmem:[%s8874_s15 + $0xf0] ss:$392 sps:$4 sm:$0xff]  }
  0xc2   : > { %v8393_v5 = vld [vmem:[%s8874_s15 + $0xf8] ss:$392 sps:$4 sm:$0xff]  }
  0xc3   : > { %8089 = vmatmul.mubr.msk.bf16.vlgmr.msra.gmra.mxu0 %vm2021_vm1, %v8911_v10  ;;  %8090 = vmatmul.mubr.msk.bf16.vlgmr.msra.gmra.mxu1 %vm2021_vm1, %v8911_v10 }
  0xc4   : > { %2694 = vmatpush1.bf16.msra.mxu0 %v8300_v6  ;;  %2735 = vmatpush1.bf16.msra.mxu1 %v8303_v7  ;;  %v8398_v6 = vld [vmem:[%s8874_s15 + $0x414] ss:$392 sps:$4 sm:$0xff]  }
  0xc5   : > { %2695 = vmatprep.subr.bf16.mxu0 %v8308_v8  ;;  %2736 = vmatprep.subr.bf16.mxu1 %v8311_v9  ;;  %v8401_v7 = vld [vmem:[%s8874_s15 + $0x41c] ss:$392 sps:$4 sm:$0xff]   ;;  %v8396_v8 = vld [vmem:[%s8874_s15 + $0x410] ss:$392 sps:$4 sm:$0xff]  }
  0xc6   : > { %2713 = vmatprep.mubr.bf16.mxu0 %v8664_v3  ;;  %2754 = vmatprep.mubr.bf16.mxu1 %v8664_v3  ;;  %v8399_v9 = vld [vmem:[%s8874_s15 + $0x418] ss:$392 sps:$4 sm:$0xff]  }
  0xc8   : > { %2696 = vmatpush1.bf16.msra.mxu0 %v8306_v11  ;;  %2737 = vmatpush1.bf16.msra.mxu1 %v8309_v12  ;;  %v8404_v11 = vld [vmem:[%s8874_s15 + $0x104] ss:$392 sps:$4 sm:$0xff]  }
  0xc9   : > { %2775 = vmatprep.subr.bf16.mxu0 %v8314_v13  ;;  %2816 = vmatprep.subr.bf16.mxu1 %v8317_v14  ;;  %v8407_v12 = vld [vmem:[%s8874_s15 + $0x10c] ss:$392 sps:$4 sm:$0xff]   ;;  %v8402_v13 = vld [vmem:[%s8874_s15 + $0x100] ss:$392 sps:$4 sm:$0xff]  }
  0xca   : > { %v8405_v14 = vld [vmem:[%s8874_s15 + $0x108] ss:$392 sps:$4 sm:$0xff]  }
  0xcb   : > { %8091 = vmatmul.mubr.msk.bf16.vlgmr.msra.gmra.mxu0 %vm2021_vm1, %v8911_v10  ;;  %8092 = vmatmul.mubr.msk.bf16.vlgmr.msra.gmra.mxu1 %vm2021_vm1, %v8911_v10 }
  0xcc   : > { %2776 = vmatpush1.bf16.msra.mxu0 %v8312_v15  ;;  %2817 = vmatpush1.bf16.msra.mxu1 %v8315_v16  ;;  %v8410_v15 = vld [vmem:[%s8874_s15 + $0x424] ss:$392 sps:$4 sm:$0xff]  }
  0xcd   : > { %2777 = vmatprep.subr.bf16.mxu0 %v8320_v17  ;;  %2818 = vmatprep.subr.bf16.mxu1 %v8323_v18  ;;  %v8413_v16 = vld [vmem:[%s8874_s15 + $0x42c] ss:$392 sps:$4 sm:$0xff]   ;;  %v8411_v17 = vld [vmem:[%s8874_s15 + $0x428] ss:$392 sps:$4 sm:$0xff]  }
  0xce   : > { %2795 = vmatprep.mubr.bf16.mxu0 %v8664_v3  ;;  %2836 = vmatprep.mubr.bf16.mxu1 %v8664_v3  ;;  %v8416_v18 = vld [vmem:[%s8874_s15 + $0x114] ss:$392 sps:$4 sm:$0xff]  }
  0xd0   : > { %2778 = vmatpush1.bf16.msra.mxu0 %v8318_v19  ;;  %2819 = vmatpush1.bf16.msra.mxu1 %v8321_v20  ;;  %v8419_v19 = vld [vmem:[%s8874_s15 + $0x11c] ss:$392 sps:$4 sm:$0xff]   ;;  %v9146_v20 = vld [vmem:[%s9720_s0] sm:$0xf] }
  0xd1   : > { %2857 = vmatprep.subr.bf16.mxu0 %v8326_v21  ;;  %2898 = vmatprep.subr.bf16.mxu1 %v8329_v22  ;;  %v8414_v21 = vld [vmem:[%s8874_s15 + $0x110] ss:$392 sps:$4 sm:$0xff]  }
  0xd2   : > { %v8417_v22 = vld [vmem:[%s8874_s15 + $0x118] ss:$392 sps:$4 sm:$0xff]  }
  0xd3   : > { %8093 = vmatmul.mubr.msk.bf16.vlgmr.msra.gmra.mxu0 %vm2021_vm1, %v8911_v10  ;;  %8094 = vmatmul.mubr.msk.bf16.vlgmr.msra.gmra.mxu1 %vm2021_vm1, %v8911_v10 }
  0xd4   : > { %2858 = vmatpush1.bf16.msra.mxu0 %v8324_v23  ;;  %2899 = vmatpush1.bf16.msra.mxu1 %v8327_v24  ;;  %v8422_v23 = vld [vmem:[%s8874_s15 + $0x434] ss:$392 sps:$4 sm:$0xff]  }
  0xd5   : > { %2859 = vmatprep.subr.bf16.mxu0 %v8332_v25  ;;  %2900 = vmatprep.subr.bf16.mxu1 %v8335_v26  ;;  %v8425_v24 = vld [vmem:[%s8874_s15 + $0x43c] ss:$392 sps:$4 sm:$0xff]   ;;  %v8420_v25 = vld [vmem:[%s8874_s15 + $0x430] ss:$392 sps:$4 sm:$0xff]  }
  0xd6   : > { %2877 = vmatprep.mubr.bf16.mxu0 %v8664_v3  ;;  %2918 = vmatprep.mubr.bf16.mxu1 %v8664_v3  ;;  %v8423_v26 = vld [vmem:[%s8874_s15 + $0x438] ss:$392 sps:$4 sm:$0xff]  }
  0xd8   : > { %2860 = vmatpush1.bf16.msra.mxu0 %v8330_v27  ;;  %2901 = vmatpush1.bf16.msra.mxu1 %v8333_v28  ;;  %v8428_v27 = vld [vmem:[%s8874_s15 + $0x124] ss:$392 sps:$4 sm:$0xff]  }
  0xd9   : > { %2939 = vmatprep.subr.bf16.mxu0 %v8338_v29  ;;  %2980 = vmatprep.subr.bf16.mxu1 %v8341_v30  ;;  %v8431_v28 = vld [vmem:[%s8874_s15 + $0x12c] ss:$392 sps:$4 sm:$0xff]   ;;  %v8426_v29 = vld [vmem:[%s8874_s15 + $0x120] ss:$392 sps:$4 sm:$0xff]  }
  0xda   : > { %v8429_v30 = vld [vmem:[%s8874_s15 + $0x128] ss:$392 sps:$4 sm:$0xff]  }
  0xdb   : > { %8095 = vmatmul.mubr.msk.bf16.vlgmr.msra.gmra.mxu0 %vm2021_vm1, %v8911_v10  ;;  %8096 = vmatmul.mubr.msk.bf16.vlgmr.msra.gmra.mxu1 %vm2021_vm1, %v8911_v10 }
  0xdc   : > { %2940 = vmatpush1.bf16.msra.mxu0 %v8336_v31  ;;  %2981 = vmatpush1.bf16.msra.mxu1 %v8339_v32  ;;  %v8434_v31 = vld [vmem:[%s8874_s15 + $0x444] ss:$392 sps:$4 sm:$0xff]  }
  0xdd   : > { %2941 = vmatprep.subr.bf16.mxu0 %v8344_v33  ;;  %2982 = vmatprep.subr.bf16.mxu1 %v8347_v34  ;;  %v8437_v32 = vld [vmem:[%s8874_s15 + $0x44c] ss:$392 sps:$4 sm:$0xff]   ;;  %v8432_v33 = vld [vmem:[%s8874_s15 + $0x440] ss:$392 sps:$4 sm:$0xff]  }
  0xde   : > { %2959 = vmatprep.mubr.bf16.mxu0 %v8664_v3  ;;  %3000 = vmatprep.mubr.bf16.mxu1 %v8664_v3  ;;  %v8435_v34 = vld [vmem:[%s8874_s15 + $0x448] ss:$392 sps:$4 sm:$0xff]  }
  0xe0   : > { %2942 = vmatpush1.bf16.msra.mxu0 %v8342_v35  ;;  %2983 = vmatpush1.bf16.msra.mxu1 %v8345_v36  ;;  %v8440_v35 = vld [vmem:[%s8874_s15 + $0x134] ss:$392 sps:$4 sm:$0xff]  }
  0xe1   : > { %3021 = vmatprep.subr.bf16.mxu0 %v8350_v37  ;;  %3062 = vmatprep.subr.bf16.mxu1 %v8353_v38  ;;  %v8443_v36 = vld [vmem:[%s8874_s15 + $0x13c] ss:$392 sps:$4 sm:$0xff]   ;;  %v8438_v37 = vld [vmem:[%s8874_s15 + $0x130] ss:$392 sps:$4 sm:$0xff]  }
  0xe2   : > { %v8441_v38 = vld [vmem:[%s8874_s15 + $0x138] ss:$392 sps:$4 sm:$0xff]  }
  0xe3   : > { %8097 = vmatmul.mubr.msk.bf16.vlgmr.msra.gmra.mxu0 %vm2021_vm1, %v8911_v10  ;;  %8098 = vmatmul.mubr.msk.bf16.vlgmr.msra.gmra.mxu1 %vm2021_vm1, %v8911_v10 }
  0xe4   : > { %3022 = vmatpush1.bf16.msra.mxu0 %v8348_v39  ;;  %3063 = vmatpush1.bf16.msra.mxu1 %v8351_v40  ;;  %v8446_v39 = vld [vmem:[%s8874_s15 + $0x454] ss:$392 sps:$4 sm:$0xff]  }
  0xe5   : > { %3023 = vmatprep.subr.bf16.mxu0 %v8356_v41  ;;  %3064 = vmatprep.subr.bf16.mxu1 %v8359_v42  ;;  %v8449_v40 = vld [vmem:[%s8874_s15 + $0x45c] ss:$392 sps:$4 sm:$0xff]   ;;  %v8444_v41 = vld [vmem:[%s8874_s15 + $0x450] ss:$392 sps:$4 sm:$0xff]  }
  0xe6   : > { %3041 = vmatprep.mubr.bf16.mxu0 %v8664_v3  ;;  %3082 = vmatprep.mubr.bf16.mxu1 %v8664_v3  ;;  %v8447_v42 = vld [vmem:[%s8874_s15 + $0x458] ss:$392 sps:$4 sm:$0xff]  }
  0xe8   : > { %3024 = vmatpush1.bf16.msra.mxu0 %v8354_v43  ;;  %3065 = vmatpush1.bf16.msra.mxu1 %v8357_v44  ;;  %v8452_v43 = vld [vmem:[%s8874_s15 + $0x144] ss:$392 sps:$4 sm:$0xff]  }
  0xe9   : > { %3103 = vmatprep.subr.bf16.mxu0 %v8362_v45  ;;  %3144 = vmatprep.subr.bf16.mxu1 %v8365_v46  ;;  %v8455_v44 = vld [vmem:[%s8874_s15 + $0x14c] ss:$392 sps:$4 sm:$0xff]   ;;  %v8450_v45 = vld [vmem:[%s8874_s15 + $0x140] ss:$392 sps:$4 sm:$0xff]  }
  0xea   : > { %v8453_v46 = vld [vmem:[%s8874_s15 + $0x148] ss:$392 sps:$4 sm:$0xff]  }
  0xeb   : > { %8099 = vmatmul.mubr.msk.bf16.vlgmr.msra.gmra.mxu0 %vm2021_vm1, %v8911_v10  ;;  %8100 = vmatmul.mubr.msk.bf16.vlgmr.msra.gmra.mxu1 %vm2021_vm1, %v8911_v10 }
  0xec   : > { %3104 = vmatpush1.bf16.msra.mxu0 %v8360_v47  ;;  %3145 = vmatpush1.bf16.msra.mxu1 %v8363_v48  ;;  %v8458_v47 = vld [vmem:[%s8874_s15 + $0x464] ss:$392 sps:$4 sm:$0xff]  }
  0xed   : > { %3105 = vmatprep.subr.bf16.mxu0 %v8368_v49  ;;  %3146 = vmatprep.subr.bf16.mxu1 %v8371_v50  ;;  %v8461_v48 = vld [vmem:[%s8874_s15 + $0x46c] ss:$392 sps:$4 sm:$0xff]   ;;  %v8456_v49 = vld [vmem:[%s8874_s15 + $0x460] ss:$392 sps:$4 sm:$0xff]  }
  0xee   : > { %3123 = vmatprep.mubr.bf16.mxu0 %v8664_v3  ;;  %3164 = vmatprep.mubr.bf16.mxu1 %v8664_v3  ;;  %v8459_v50 = vld [vmem:[%s8874_s15 + $0x468] ss:$392 sps:$4 sm:$0xff]  }
  0xf0   : > { %3106 = vmatpush1.bf16.msra.mxu0 %v8366_v51  ;;  %3147 = vmatpush1.bf16.msra.mxu1 %v8369_v52  ;;  %v8464_v51 = vld [vmem:[%s8874_s15 + $0x154] ss:$392 sps:$4 sm:$0xff]  }
  0xf1   : > { %3185 = vmatprep.subr.bf16.mxu0 %v8374_v53  ;;  %3226 = vmatprep.subr.bf16.mxu1 %v8377_v54  ;;  %v8467_v52 = vld [vmem:[%s8874_s15 + $0x15c] ss:$392 sps:$4 sm:$0xff]   ;;  %v8462_v53 = vld [vmem:[%s8874_s15 + $0x150] ss:$392 sps:$4 sm:$0xff]  }
  0xf2   : > { %v8465_v54 = vld [vmem:[%s8874_s15 + $0x158] ss:$392 sps:$4 sm:$0xff]  }
  0xf3   : > { %8101 = vmatmul.mubr.msk.bf16.vlgmr.msra.gmra.mxu0 %vm2021_vm1, %v8911_v10  ;;  %8102 = vmatmul.mubr.msk.bf16.vlgmr.msra.gmra.mxu1 %vm2021_vm1, %v8911_v10 }
  0xf4   : > { %3186 = vmatpush1.bf16.msra.mxu0 %v8372_v55  ;;  %3227 = vmatpush1.bf16.msra.mxu1 %v8375_v56  ;;  %v8470_v55 = vld [vmem:[%s8874_s15 + $0x474] ss:$392 sps:$4 sm:$0xff]  }
  0xf5   : > { %3187 = vmatprep.subr.bf16.mxu0 %v8380_v57  ;;  %3228 = vmatprep.subr.bf16.mxu1 %v8383_v58  ;;  %v8473_v56 = vld [vmem:[%s8874_s15 + $0x47c] ss:$392 sps:$4 sm:$0xff]   ;;  %v8468_v57 = vld [vmem:[%s8874_s15 + $0x470] ss:$392 sps:$4 sm:$0xff]  }
  0xf6   : > { %3205 = vmatprep.mubr.bf16.mxu0 %v8664_v3  ;;  %3246 = vmatprep.mubr.bf16.mxu1 %v8664_v3  ;;  %v8471_v58 = vld [vmem:[%s8874_s15 + $0x478] ss:$392 sps:$4 sm:$0xff]  }
  0xf8   : > { %3188 = vmatpush1.bf16.msra.mxu0 %v8378_v59  ;;  %3229 = vmatpush1.bf16.msra.mxu1 %v8381_v60  ;;  %v8476_v59 = vld [vmem:[%s8874_s15 + $0x164] ss:$392 sps:$4 sm:$0xff]  }
  0xf9   : > { %3267 = vmatprep.subr.bf16.mxu0 %v8386_v61  ;;  %3308 = vmatprep.subr.bf16.mxu1 %v8389_v62  ;;  %v8479_v60 = vld [vmem:[%s8874_s15 + $0x16c] ss:$392 sps:$4 sm:$0xff]   ;;  %v8474_v61 = vld [vmem:[%s8874_s15 + $0x160] ss:$392 sps:$4 sm:$0xff]  }
  0xfa   : > { %v8477_v62 = vld [vmem:[%s8874_s15 + $0x168] ss:$392 sps:$4 sm:$0xff]  }
  0xfb   : > { %8103 = vmatmul.mubr.msk.bf16.vlgmr.msra.gmra.mxu0 %vm2021_vm1, %v8911_v10  ;;  %8104 = vmatmul.mubr.msk.bf16.vlgmr.msra.gmra.mxu1 %vm2021_vm1, %v8911_v10 }
  0xfc   : > { %3268 = vmatpush1.bf16.msra.mxu0 %v8384_v63  ;;  %3309 = vmatpush1.bf16.msra.mxu1 %v8387_v0  ;;  %v8482_v63 = vld [vmem:[%s8874_s15 + $0x484] ss:$392 sps:$4 sm:$0xff]  }
  0xfd   : > { %3269 = vmatprep.subr.bf16.mxu0 %v8392_v1  ;;  %3310 = vmatprep.subr.bf16.mxu1 %v8395_v2  ;;  %v8485_v0 = vld [vmem:[%s8874_s15 + $0x48c] ss:$392 sps:$4 sm:$0xff]   ;;  %v8480_v1 = vld [vmem:[%s8874_s15 + $0x480] ss:$392 sps:$4 sm:$0xff]  }
  0xfe   : > { %3287 = vmatprep.mubr.bf16.mxu0 %v8664_v3  ;;  %3328 = vmatprep.mubr.bf16.mxu1 %v8664_v3  ;;  %v8483_v2 = vld [vmem:[%s8874_s15 + $0x488] ss:$392 sps:$4 sm:$0xff]  }
 0x100   : > { %3270 = vmatpush1.bf16.msra.mxu0 %v8390_v4  ;;  %3311 = vmatpush1.bf16.msra.mxu1 %v8393_v5  ;;  %v8488_v4 = vld [vmem:[%s8874_s15 + $0x174] ss:$392 sps:$4 sm:$0xff]  }
 0x101   : > { %3349 = vmatprep.subr.bf16.mxu0 %v8398_v6  ;;  %3390 = vmatprep.subr.bf16.mxu1 %v8401_v7  ;;  %v8491_v5 = vld [vmem:[%s8874_s15 + $0x17c] ss:$392 sps:$4 sm:$0xff]   ;;  %v8486_v6 = vld [vmem:[%s8874_s15 + $0x170] ss:$392 sps:$4 sm:$0xff]  }
 0x102   : > { %v8489_v7 = vld [vmem:[%s8874_s15 + $0x178] ss:$392 sps:$4 sm:$0xff]  }
 0x103   : > { %8105 = vmatmul.mubr.msk.bf16.vlgmr.msra.gmra.mxu0 %vm2021_vm1, %v8911_v10  ;;  %8106 = vmatmul.mubr.msk.bf16.vlgmr.msra.gmra.mxu1 %vm2021_vm1, %v8911_v10  ;;  %v8408_v10 = vld [vmem:[%s8874_s15 + $0x420] ss:$392 sps:$4 sm:$0xff]  }
 0x104   : > { %3350 = vmatpush1.bf16.msra.mxu0 %v8396_v8  ;;  %3391 = vmatpush1.bf16.msra.mxu1 %v8399_v9  ;;  %v8494_v8 = vld [vmem:[%s8874_s15 + $0x494] ss:$392 sps:$4 sm:$0xff]   ;;  %v551_v9 = vlaneseq }
 0x105   : > { %3351 = vmatprep.subr.bf16.mxu0 %v8404_v11  ;;  %3392 = vmatprep.subr.bf16.mxu1 %v8407_v12  ;;  %v4232_v11 = vld [vmem:[%s8887_s13 + $0x318] sm:$0xff]  ;;  %v8492_v12 = vld [vmem:[%s8874_s15 + $0x490] ss:$392 sps:$4 sm:$0xff]  }
 0x106   : > { %3369 = vmatprep.mubr.bf16.mxu0 %v8664_v3  ;;  %3410 = vmatprep.mubr.bf16.mxu1 %v8664_v3 }
 0x108   : > { %3352 = vmatpush1.bf16.msra.mxu0 %v8402_v13  ;;  %3393 = vmatpush1.bf16.msra.mxu1 %v8405_v14  ;;  %v8497_v13 = vld [vmem:[%s8874_s15 + $0x184] ss:$392 sps:$4 sm:$0xff]   ;;  %v552_v14 = vshrl.u32 %v551_v9, 7 }
 0x109   : > { %3431 = vmatprep.subr.bf16.mxu0 %v8410_v15  ;;  %3472 = vmatprep.subr.bf16.mxu1 %v8413_v16  ;;  %v4231_v15 = vld [vmem:[%s8887_s13 + $0x310] sm:$0xff]  ;;  %v4134_v16 = vld [vmem:[%s8887_s13 + $0x8] sm:$0xff] }
 0x10a   : > { %v4242_v9 = vld [vmem:[%s8887_s13 + $0x368] sm:$0xff] }
 0x10b   : > { %8107 = vmatmul.mubr.msk.bf16.vlgmr.msra.gmra.mxu0 %vm2021_vm1, %v9146_v20  ;;  %8108 = vmatmul.mubr.msk.bf16.vlgmr.msra.gmra.mxu1 %vm2021_vm1, %v9146_v20 }
 0x10c   : > { %3432 = vmatpush1.bf16.msra.mxu0 %v8408_v10  ;;  %3473 = vmatpush1.bf16.msra.mxu1 %v8411_v17  ;;  %v8495_v10 = vld [vmem:[%s8874_s15 + $0x180] ss:$392 sps:$4 sm:$0xff]   ;;  %v9252_v17 = vsub.s32 2, %v552_v14 }
 0x10d   : > { %3433 = vmatprep.subr.bf16.mxu0 %v8416_v18  ;;  %3474 = vmatprep.subr.bf16.mxu1 %v8419_v19  ;;  %v9254_v18 = vsub.s32 0, %v552_v14  ;;  %v9257_v19 = vld [vmem:[%s8881_s16] sm:$0xff] }
 0x10e   : > { %3451 = vmatprep.mubr.bf16.mxu0 %v8664_v3  ;;  %3492 = vmatprep.mubr.bf16.mxu1 %v8664_v3 }
 0x110   : > { %3434 = vmatpush1.bf16.msra.mxu0 %v8414_v21  ;;  %3475 = vmatpush1.bf16.msra.mxu1 %v8417_v22  ;;  %v4234_v21 = vld [vmem:[%s8887_s13 + $0x328] sm:$0xff]  ;;  %v9260_v22 = vsub.s32 1, %v552_v14 }
 0x111   : > { %3513 = vmatprep.subr.bf16.mxu0 %v8422_v23  ;;  %3554 = vmatprep.subr.bf16.mxu1 %v8425_v24  ;;  %v9262_v23 = vsub.s32 3, %v552_v14  ;;  %v4133_v24 = vld [vmem:[%s8887_s13] sm:$0xff] }
 0x113   : > { %8109 = vmatmul.mubr.msk.bf16.vlgmr.msra.gmra.mxu0 %vm2021_vm1, %v9146_v20  ;;  %8110 = vmatmul.mubr.msk.bf16.vlgmr.msra.gmra.mxu1 %vm2021_vm1, %v9146_v20 }
 0x114   : > { %3514 = vmatpush1.bf16.msra.mxu0 %v8420_v25  ;;  %3555 = vmatpush1.bf16.msra.mxu1 %v8423_v26  ;;  %v4236_v25 = vld [vmem:[%s8887_s13 + $0x338] sm:$0xff]  ;;  %v554_v26 = vrot.slane %v9257_v19, %v9254_v18 }
 0x115   : > { %3515 = vmatprep.subr.bf16.mxu0 %v8428_v27  ;;  %3556 = vmatprep.subr.bf16.mxu1 %v8431_v28  ;;  %v4233_v27 = vld [vmem:[%s8887_s13 + $0x320] sm:$0xff]  ;;  %v558_v28 = vrot.slane %v9257_v19, %v9260_v22 }
 0x116   : > { %3533 = vmatprep.mubr.bf16.mxu0 %v8664_v3  ;;  %3574 = vmatprep.mubr.bf16.mxu1 %v8664_v3 }
 0x118   : > { %3516 = vmatpush1.bf16.msra.mxu0 %v8426_v29  ;;  %3557 = vmatpush1.bf16.msra.mxu1 %v8429_v30  ;;  %v566_v29 = vrot.slane %v9257_v19, %v9262_v23  ;;  %v4136_v30 = vld [vmem:[%s8887_s13 + $0x18] sm:$0xff] }
 0x119   : > { %3595 = vmatprep.subr.bf16.mxu0 %v8434_v31  ;;  %3636 = vmatprep.subr.bf16.mxu1 %v8437_v32 }
 0x11b   : > { %8111 = vmatmul.mubr.msk.bf16.vlgmr.msra.gmra.mxu0 %vm2021_vm1, %v9146_v20  ;;  %8112 = vmatmul.mubr.msk.bf16.vlgmr.msra.gmra.mxu1 %vm2021_vm1, %v9146_v20 }
 0x11c   : > { %3596 = vmatpush1.bf16.msra.mxu0 %v8432_v33  ;;  %3637 = vmatpush1.bf16.msra.mxu1 %v8435_v34  ;;  %v9278_v34 = vsub.s32 6, %v552_v14 }
 0x11d   : > { %3597 = vmatprep.subr.bf16.mxu0 %v8440_v35  ;;  %3638 = vmatprep.subr.bf16.mxu1 %v8443_v36 }
 0x11e   : > { %3615 = vmatprep.mubr.bf16.mxu0 %v8664_v3  ;;  %3656 = vmatprep.mubr.bf16.mxu1 %v8664_v3 }
 0x120   : > { %3598 = vmatpush1.bf16.msra.mxu0 %v8438_v37  ;;  %3639 = vmatpush1.bf16.msra.mxu1 %v8441_v38  ;;  %v4135_v38 = vld [vmem:[%s8887_s13 + $0x10] sm:$0xff] }
 0x121   : > { %3677 = vmatprep.subr.bf16.mxu0 %v8446_v39  ;;  %3718 = vmatprep.subr.bf16.mxu1 %v8449_v40  ;;  %v9281_v39 = vsub.s32 4, %v552_v14 }
 0x123   : > { %8113 = vmatmul.mubr.msk.bf16.vlgmr.msra.gmra.mxu0 %vm2021_vm1, %v9146_v20  ;;  %8114 = vmatmul.mubr.msk.bf16.vlgmr.msra.gmra.mxu1 %vm2021_vm1, %v9146_v20 }
 0x124   : > { %3678 = vmatpush1.bf16.msra.mxu0 %v8444_v41  ;;  %3719 = vmatpush1.bf16.msra.mxu1 %v8447_v42  ;;  %v9283_v42 = vsub.s32 5, %v552_v14 }
 0x125   : > { %3679 = vmatprep.subr.bf16.mxu0 %v8452_v43  ;;  %3720 = vmatprep.subr.bf16.mxu1 %v8455_v44  ;;  %v4238_v43 = vld [vmem:[%s8887_s13 + $0x348] sm:$0xff]  ;;  %v9286_v44 = vsub.s32 7, %v552_v14 }
 0x126   : > { %3697 = vmatprep.mubr.bf16.mxu0 %v8664_v3  ;;  %3738 = vmatprep.mubr.bf16.mxu1 %v8664_v3 }
 0x128   : > { %3680 = vmatpush1.bf16.msra.mxu0 %v8450_v45  ;;  %3721 = vmatpush1.bf16.msra.mxu1 %v8453_v46 }
 0x129   : > { %3759 = vmatprep.subr.bf16.mxu0 %v8458_v47  ;;  %3800 = vmatprep.subr.bf16.mxu1 %v8461_v48 }
 0x12b   : > { %8115 = vmatmul.mubr.msk.bf16.vlgmr.msra.gmra.mxu0 %vm2021_vm1, %v9146_v20  ;;  %8116 = vmatmul.mubr.msk.bf16.vlgmr.msra.gmra.mxu1 %vm2021_vm1, %v9146_v20 }
 0x12c   : > { %3760 = vmatpush1.bf16.msra.mxu0 %v8456_v49  ;;  %3801 = vmatpush1.bf16.msra.mxu1 %v8459_v50  ;;  %v578_v49 = vrot.slane %v9257_v19, %v9278_v34 }
 0x12d   : > { %3761 = vmatprep.subr.bf16.mxu0 %v8464_v51  ;;  %3802 = vmatprep.subr.bf16.mxu1 %v8467_v52 }
 0x12e   : > { %3779 = vmatprep.mubr.bf16.mxu0 %v8664_v3  ;;  %3820 = vmatprep.mubr.bf16.mxu1 %v8664_v3 }
 0x130   : > { %3762 = vmatpush1.bf16.msra.mxu0 %v8462_v53  ;;  %3803 = vmatpush1.bf16.msra.mxu1 %v8465_v54  ;;  %v570_v53 = vrot.slane %v9257_v19, %v9281_v39  ;;  %v4235_v54 = vld [vmem:[%s8887_s13 + $0x330] sm:$0xff] }
 0x131   : > { %3841 = vmatprep.subr.bf16.mxu0 %v8470_v55  ;;  %3882 = vmatprep.subr.bf16.mxu1 %v8473_v56  ;;  %v4237_v55 = vld [vmem:[%s8887_s13 + $0x340] sm:$0xff]  ;;  %v574_v56 = vrot.slane %v9257_v19, %v9283_v42 }
 0x133   : > { %8117 = vmatmul.mubr.msk.bf16.vlgmr.msra.gmra.mxu0 %vm2021_vm1, %v9146_v20  ;;  %8118 = vmatmul.mubr.msk.bf16.vlgmr.msra.gmra.mxu1 %vm2021_vm1, %v9146_v20 }
 0x134   : > { %3842 = vmatpush1.bf16.msra.mxu0 %v8468_v57  ;;  %3883 = vmatpush1.bf16.msra.mxu1 %v8471_v58  ;;  %v582_v57 = vrot.slane %v9257_v19, %v9286_v44  ;;  %v4138_v58 = vld [vmem:[%s8887_s13 + $0x28] sm:$0xff] }
 0x135   : > { %3843 = vmatprep.subr.bf16.mxu0 %v8476_v59  ;;  %3884 = vmatprep.subr.bf16.mxu1 %v8479_v60  ;;  %v4140_v59 = vld [vmem:[%s8887_s13 + $0x38] sm:$0xff] }
 0x136   : > { %3861 = vmatprep.mubr.bf16.mxu0 %v8664_v3  ;;  %3902 = vmatprep.mubr.bf16.mxu1 %v8664_v3 }
 0x138   : > { %3844 = vmatpush1.bf16.msra.mxu0 %v8474_v61  ;;  %3885 = vmatpush1.bf16.msra.mxu1 %v8477_v62 }
 0x139   : > { %3923 = vmatprep.subr.bf16.mxu0 %v8482_v63  ;;  %3964 = vmatprep.subr.bf16.mxu1 %v8485_v0 }
 0x13b   : > { %8119 = vmatmul.mubr.msk.bf16.vlgmr.msra.gmra.mxu0 %vm2021_vm1, %v9146_v20  ;;  %8120 = vmatmul.mubr.msk.bf16.vlgmr.msra.gmra.mxu1 %vm2021_vm1, %v9146_v20 }
 0x13c   : > { %3924 = vmatpush1.bf16.msra.mxu0 %v8480_v1  ;;  %3965 = vmatpush1.bf16.msra.mxu1 %v8483_v2  ;;  %v4137_v2 = vld [vmem:[%s8887_s13 + $0x20] sm:$0xff] }
 0x13d   : > { %3925 = vmatprep.subr.bf16.mxu0 %v8488_v4  ;;  %3966 = vmatprep.subr.bf16.mxu1 %v8491_v5  ;;  %v4139_v4 = vld [vmem:[%s8887_s13 + $0x30] sm:$0xff] }
 0x13e   : > { %3943 = vmatprep.mubr.bf16.mxu0 %v8664_v3  ;;  %3984 = vmatprep.mubr.bf16.mxu1 %v8664_v3 }
 0x140   : > { %3926 = vmatpush1.bf16.msra.mxu0 %v8486_v6  ;;  %3967 = vmatpush1.bf16.msra.mxu1 %v8489_v7  ;;  %v9303_v7 = vld [vmem:[%s8881_s16 + $0x8] sm:$0xff] }
 0x141   : > { %4005 = vmatprep.subr.bf16.mxu0 %v8494_v8  ;;  %4357 = vmatprep.subr.mxu1 %v4232_v11  ;;  %v4240_v8 = vld [vmem:[%s8887_s13 + $0x358] sm:$0xff] }
 0x143   : > { %8121 = vmatmul.mubr.msk.bf16.vlgmr.msra.gmra.mxu0 %vm2021_vm1, %v9146_v20  ;;  %8122 = vmatmul.mubr.msk.bf16.vlgmr.msra.gmra.mxu1 %vm2021_vm1, %v9146_v20 }
 0x144   : > { %4006 = vmatpush1.bf16.msra.mxu0 %v8492_v12  ;;  %4025 = vmatprep.mubr.bf16.mxu0 %v8664_v3  ;;  %v562_v3 = vrot.slane %v9257_v19, %v9252_v17 }
 0x145   : > { %4007 = vmatprep.subr.bf16.mxu0 %v8497_v13  ;;  %4358 = vmatpush1.xpose.msra.mxu1 %v4231_v15 }
 0x146   : > { %4359 = vmatprep.subr.mxu1 %v4134_v16  ;;  %v594_v16 = vrot.slane %v9303_v7, %v9252_v17 }
 0x148   : > { %4008 = vmatpush1.bf16.msra.mxu0 %v8495_v10 }
 0x149   : > { %4427 = vmatprep.subr.mxu0 %v4234_v21  ;;  %4360 = vmatpush1.xpose.msra.mxu1 %v4133_v24  ;;  %v586_v24 = vrot.slane %v9303_v7, %v9254_v18 }
 0x14a   : > { %4497 = vmatprep.subr.mxu1 %v4236_v25  ;;  %v4239_v25 = vld [vmem:[%s8887_s13 + $0x350] sm:$0xff] }
 0x14b   : > { %v2059_v31 = vpop.f32.mrf.mxu0  ;;  %v2100_v32 = vpop.f32.mrf.mxu1  ;;  %8123 = vmatmul.mubr.msk.bf16.vlgmr.msra.gmra.mxu0 %vm2021_vm1, %v9146_v20 }
 0x14c   : > { %v2101_v33 = vadd.f32 %v2100_v32, %v562_v3  ;;  %4428 = vmatpush1.xpose.msra.mxu0 %v4233_v27  ;;  %v2060_v35 = vadd.f32 %v2059_v31, %v554_v26  ;;  %v4241_v3 = vld [vmem:[%s8887_s13 + $0x360] sm:$0xff]  ;;  %v590_v26 = vrot.slane %v9303_v7, %v9260_v22  ;;  %v598_v27 = vrot.slane %v9303_v7, %v9262_v23 }
 0x14d   : > { %v2061_v36 = vpop.f32.mrf.mxu0  ;;  %v2102_v37 = vpop.f32.mrf.mxu1  ;;  %4429 = vmatprep.subr.mxu0 %v4136_v30 }
 0x14e   : > { %v2062_v40 = vadd.f32 %v2061_v36, %v558_v28  ;;  %v2103_v41 = vadd.f32 %v2102_v37, %v566_v29  ;;  %v4036_v20 = vmax.f32 %v2101_v33, 0.0  ;;  %v4034_v50 = vmax.f32 %v2060_v35, 0.0  ;;  %v4142_v28 = vld [vmem:[%s8887_s13 + $0x48] sm:$0xff]  ;;  %v4144_v29 = vld [vmem:[%s8887_s13 + $0x58] sm:$0xff]  ;;  %v4141_v37 = vld [vmem:[%s8887_s13 + $0x40] sm:$0xff] }
 0x14f   : > { %v2063_v45 = vpop.f32.mrf.mxu0  ;;  %v2104_v46 = vpop.f32.mrf.mxu1 }
 0x150   : > { %v4035_v47 = vmax.f32 %v2062_v40, 0.0  ;;  %v4037_v48 = vmax.f32 %v2103_v41, 0.0  ;;  %4430 = vmatpush1.xpose.msra.mxu0 %v4135_v38  ;;  %v4143_v38 = vld [vmem:[%s8887_s13 + $0x50] sm:$0xff] }
 0x151   : > { %v2064_v51 = vpop.f32.mrf.mxu0  ;;  %v2105_v52 = vpop.f32.mrf.mxu1  ;;  %4567 = vmatprep.subr.mxu0 %v4238_v43  ;;  %v4244_v43 = vld [vmem:[%s8887_s13 + $0x378] sm:$0xff] }
 0x152   : > { %4393 = vmatprep.mubr.f32.mxu1 %v4035_v47  ;;  %4463 = vmatprep.mubr.f32.mxu0 %v4037_v48 }
 0x153   : > { %v2141_v60 = vpop.f32.mrf.mxu0  ;;  %4394 = vmatmul.mubr.f32.vlgmr.msra.gmra.mxu1 %v4034_v50  ;;  %4464 = vmatmul.mubr.f32.vlgmr.msra.gmra.mxu0 %v4036_v20  ;;  %v2182_v61 = vpop.f32.mrf.mxu1  ;;  %v4246_v20 = vld [vmem:[%s8887_s13 + $0x388] sm:$0xff]  ;;  %v610_v50 = vrot.slane %v9303_v7, %v9278_v34 }
 0x154   : > { %v2183_v62 = vadd.f32 %v2182_v61, %v578_v49  ;;  %4498 = vmatpush1.xpose.msra.mxu1 %v4235_v54  ;;  %4568 = vmatpush1.xpose.msra.mxu0 %v4237_v55  ;;  %v2142_v63 = vadd.f32 %v2141_v60, %v570_v53  ;;  %v602_v54 = vrot.slane %v9303_v7, %v9281_v39  ;;  %v4243_v55 = vld [vmem:[%s8887_s13 + $0x370] sm:$0xff]  ;;  %v4148_v60 = vld [vmem:[%s8887_s13 + $0x78] sm:$0xff] }
 0x155   : > { %v2143_v0 = vpop.f32.mrf.mxu0  ;;  %v2184_v1 = vpop.f32.mrf.mxu1  ;;  %4499 = vmatprep.subr.mxu1 %v4138_v58  ;;  %4569 = vmatprep.subr.mxu0 %v4140_v59  ;;  %v614_v58 = vrot.slane %v9303_v7, %v9286_v44  ;;  %v4146_v59 = vld [vmem:[%s8887_s13 + $0x68] sm:$0xff] }
 0x156   : > { %v2144_v5 = vadd.f32 %v2143_v0, %v574_v56  ;;  %v2185_v6 = vadd.f32 %v2184_v1, %v582_v57  ;;  %v4040_v11 = vmax.f32 %v2183_v62, 0.0  ;;  %v4038_v10 = vmax.f32 %v2142_v63, 0.0  ;;  %v4245_v56 = vld [vmem:[%s8887_s13 + $0x380] sm:$0xff] }
 0x157   : > { %v2145_v12 = vpop.f32.mrf.mxu0  ;;  %v2186_v13 = vpop.f32.mrf.mxu1  ;;  %v606_v57 = vrot.slane %v9303_v7, %v9283_v42 }
 0x158   : > { %v4039_v14 = vmax.f32 %v2144_v5, 0.0  ;;  %v4041_v15 = vmax.f32 %v2185_v6, 0.0  ;;  %4500 = vmatpush1.xpose.msra.mxu1 %v4137_v2  ;;  %4570 = vmatpush1.xpose.msra.mxu0 %v4139_v4  ;;  %v4145_v4 = vld [vmem:[%s8887_s13 + $0x60] sm:$0xff]  ;;  %v4147_v5 = vld [vmem:[%s8887_s13 + $0x70] sm:$0xff] }
 0x159   : > { %v2146_v19 = vpop.f32.mrf.mxu0  ;;  %v2187_v21 = vpop.f32.mrf.mxu1  ;;  %4637 = vmatprep.subr.mxu1 %v4240_v8  ;;  %4707 = vmatprep.subr.mxu0 %v4242_v9  ;;  %v9338_v8 = vld [vmem:[%s8881_s16 + $0x10] sm:$0xff]  ;;  %v4248_v9 = vld [vmem:[%s8887_s13 + $0x398] sm:$0xff] }
 0x15a   : > { %4533 = vmatprep.mubr.f32.mxu1 %v4039_v14  ;;  %4603 = vmatprep.mubr.f32.mxu0 %v4041_v15 }
 0x15b   : > { %v2223_v30 = vpop.f32.mrf.mxu0  ;;  %4534 = vmatmul.mubr.f32.vlgmr.msra.gmra.mxu1 %v4038_v10  ;;  %v2264_v31 = vpop.f32.mrf.mxu1  ;;  %4604 = vmatmul.mubr.f32.vlgmr.msra.gmra.mxu0 %v4040_v11  ;;  %v4250_v11 = vld [vmem:[%s8887_s13 + $0x3a8] sm:$0xff]  ;;  %v626_v10 = vrot.slane %v9338_v8, %v9252_v17 }
 0x15c   : > { %v2265_v32 = vadd.f32 %v2264_v31, %v594_v16  ;;  %4638 = vmatpush1.xpose.msra.mxu1 %v4239_v25  ;;  %4708 = vmatpush1.xpose.msra.mxu0 %v4241_v3  ;;  %v2224_v33 = vadd.f32 %v2223_v30, %v586_v24  ;;  %v618_v25 = vrot.slane %v9338_v8, %v9254_v18  ;;  %v4247_v3 = vld [vmem:[%s8887_s13 + $0x390] sm:$0xff]  ;;  %v4152_v30 = vld [vmem:[%s8887_s13 + $0x98] sm:$0xff] }
 0x15d   : > { %v2225_v35 = vpop.f32.mrf.mxu0  ;;  %v2266_v36 = vpop.f32.mrf.mxu1  ;;  %4639 = vmatprep.subr.mxu1 %v4142_v28  ;;  %4709 = vmatprep.subr.mxu0 %v4144_v29  ;;  %v630_v28 = vrot.slane %v9338_v8, %v9262_v23  ;;  %v4150_v29 = vld [vmem:[%s8887_s13 + $0x88] sm:$0xff] }
 0x15e   : > { %v2226_v40 = vadd.f32 %v2225_v35, %v590_v26  ;;  %v2267_v41 = vadd.f32 %v2266_v36, %v598_v27  ;;  %v4044_v45 = vmax.f32 %v2265_v32, 0.0  ;;  %v4042_v51 = vmax.f32 %v2224_v33, 0.0  ;;  %v4249_v26 = vld [vmem:[%s8887_s13 + $0x3a0] sm:$0xff] }
 0x15f   : > { %v2227_v46 = vpop.f32.mrf.mxu0  ;;  %v2268_v47 = vpop.f32.mrf.mxu1  ;;  %v622_v27 = vrot.slane %v9338_v8, %v9260_v22 }
 0x160   : > { %v4043_v48 = vmax.f32 %v2226_v40, 0.0  ;;  %v4045_v49 = vmax.f32 %v2267_v41, 0.0  ;;  %4640 = vmatpush1.xpose.msra.mxu1 %v4141_v37  ;;  %4710 = vmatpush1.xpose.msra.mxu0 %v4143_v38  ;;  %v4149_v38 = vld [vmem:[%s8887_s13 + $0x80] sm:$0xff]  ;;  %v4151_v40 = vld [vmem:[%s8887_s13 + $0x90] sm:$0xff] }
 0x161   : > { %v2228_v52 = vpop.f32.mrf.mxu0  ;;  %v2269_v53 = vpop.f32.mrf.mxu1  ;;  %4777 = vmatprep.subr.mxu1 %v4244_v43  ;;  %4847 = vmatprep.subr.mxu0 %v4246_v20  ;;  %v4252_v20 = vld [vmem:[%s8887_s13 + $0x3b8] sm:$0xff] }
 0x162   : > { %4673 = vmatprep.mubr.f32.mxu1 %v4043_v48  ;;  %4743 = vmatprep.mubr.f32.mxu0 %v4045_v49 }
 0x163   : > { %v2305_v61 = vpop.f32.mrf.mxu0  ;;  %4674 = vmatmul.mubr.f32.vlgmr.msra.gmra.mxu1 %v4042_v51  ;;  %v2346_v62 = vpop.f32.mrf.mxu1  ;;  %4744 = vmatmul.mubr.f32.vlgmr.msra.gmra.mxu0 %v4044_v45  ;;  %v4254_v45 = vld [vmem:[%s8887_s13 + $0x3c8] sm:$0xff]  ;;  %v642_v51 = vrot.slane %v9338_v8, %v9278_v34 }
 0x164   : > { %v2347_v63 = vadd.f32 %v2346_v62, %v610_v50  ;;  %4778 = vmatpush1.xpose.msra.mxu1 %v4243_v55  ;;  %4848 = vmatpush1.xpose.msra.mxu0 %v4245_v56  ;;  %v2306_v0 = vadd.f32 %v2305_v61, %v602_v54  ;;  %v634_v55 = vrot.slane %v9338_v8, %v9281_v39  ;;  %v4251_v56 = vld [vmem:[%s8887_s13 + $0x3b0] sm:$0xff]  ;;  %v4156_v61 = vld [vmem:[%s8887_s13 + $0xb8] sm:$0xff] }
 0x165   : > { %v2307_v1 = vpop.f32.mrf.mxu0  ;;  %v2348_v2 = vpop.f32.mrf.mxu1  ;;  %4779 = vmatprep.subr.mxu1 %v4146_v59  ;;  %4849 = vmatprep.subr.mxu0 %v4148_v60  ;;  %v646_v59 = vrot.slane %v9338_v8, %v9286_v44  ;;  %v4154_v60 = vld [vmem:[%s8887_s13 + $0xa8] sm:$0xff] }
 0x166   : > { %v2308_v6 = vadd.f32 %v2307_v1, %v606_v57  ;;  %v2349_v7 = vadd.f32 %v2348_v2, %v614_v58  ;;  %v4048_v12 = vmax.f32 %v2347_v63, 0.0  ;;  %v4046_v19 = vmax.f32 %v2306_v0, 0.0  ;;  %v4253_v57 = vld [vmem:[%s8887_s13 + $0x3c0] sm:$0xff] }
 0x167   : > { %v2309_v13 = vpop.f32.mrf.mxu0  ;;  %v2350_v14 = vpop.f32.mrf.mxu1  ;;  %v638_v58 = vrot.slane %v9338_v8, %v9283_v42 }
 0x168   : > { %v4047_v15 = vmax.f32 %v2308_v6, 0.0  ;;  %v4049_v16 = vmax.f32 %v2349_v7, 0.0  ;;  %4780 = vmatpush1.xpose.msra.mxu1 %v4145_v4  ;;  %4850 = vmatpush1.xpose.msra.mxu0 %v4147_v5  ;;  %v4153_v5 = vld [vmem:[%s8887_s13 + $0xa0] sm:$0xff]  ;;  %v4155_v6 = vld [vmem:[%s8887_s13 + $0xb0] sm:$0xff] }
 0x169   : > { %v2310_v21 = vpop.f32.mrf.mxu0  ;;  %v2351_v24 = vpop.f32.mrf.mxu1  ;;  %4917 = vmatprep.subr.mxu1 %v4248_v9  ;;  %4987 = vmatprep.subr.mxu0 %v4250_v11  ;;  %v9373_v9 = vld [vmem:[%s8881_s16 + $0x18] sm:$0xff] }
 0x16a   : > { %4813 = vmatprep.mubr.f32.mxu1 %v4047_v15  ;;  %4883 = vmatprep.mubr.f32.mxu0 %v4049_v16  ;;  %v4256_v11 = vld [vmem:[%s8887_s13 + $0x3d8] sm:$0xff] }
 0x16b   : > { %v2387_v31 = vpop.f32.mrf.mxu0  ;;  %4814 = vmatmul.mubr.f32.vlgmr.msra.gmra.mxu1 %v4046_v19  ;;  %v2428_v32 = vpop.f32.mrf.mxu1  ;;  %4884 = vmatmul.mubr.f32.vlgmr.msra.gmra.mxu0 %v4048_v12  ;;  %v4258_v12 = vld [vmem:[%s8887_s13 + $0x3e8] sm:$0xff]  ;;  %v658_v19 = vrot.slane %v9373_v9, %v9252_v17 }
 0x16c   : > { %v2429_v33 = vadd.f32 %v2428_v32, %v626_v10  ;;  %4918 = vmatpush1.xpose.msra.mxu1 %v4247_v3  ;;  %4988 = vmatpush1.xpose.msra.mxu0 %v4249_v26  ;;  %v2388_v35 = vadd.f32 %v2387_v31, %v618_v25  ;;  %v650_v3 = vrot.slane %v9373_v9, %v9254_v18  ;;  %v4255_v26 = vld [vmem:[%s8887_s13 + $0x3d0] sm:$0xff]  ;;  %v4160_v31 = vld [vmem:[%s8887_s13 + $0xd8] sm:$0xff] }
 0x16d   : > { %v2389_v36 = vpop.f32.mrf.mxu0  ;;  %v2430_v37 = vpop.f32.mrf.mxu1  ;;  %4919 = vmatprep.subr.mxu1 %v4150_v29  ;;  %4989 = vmatprep.subr.mxu0 %v4152_v30  ;;  %v662_v29 = vrot.slane %v9373_v9, %v9262_v23  ;;  %v4158_v30 = vld [vmem:[%s8887_s13 + $0xc8] sm:$0xff] }
 0x16e   : > { %v2390_v41 = vadd.f32 %v2389_v36, %v622_v27  ;;  %v2431_v43 = vadd.f32 %v2430_v37, %v630_v28  ;;  %v4052_v46 = vmax.f32 %v2429_v33, 0.0  ;;  %v4050_v52 = vmax.f32 %v2388_v35, 0.0  ;;  %v4257_v27 = vld [vmem:[%s8887_s13 + $0x3e0] sm:$0xff] }
 0x16f   : > { %v2391_v47 = vpop.f32.mrf.mxu0  ;;  %v2432_v48 = vpop.f32.mrf.mxu1  ;;  %v654_v28 = vrot.slane %v9373_v9, %v9260_v22 }
 0x170   : > { %v4051_v49 = vmax.f32 %v2390_v41, 0.0  ;;  %v4053_v50 = vmax.f32 %v2431_v43, 0.0  ;;  %4920 = vmatpush1.xpose.msra.mxu1 %v4149_v38  ;;  %4990 = vmatpush1.xpose.msra.mxu0 %v4151_v40  ;;  %v4157_v40 = vld [vmem:[%s8887_s13 + $0xc0] sm:$0xff]  ;;  %v4159_v41 = vld [vmem:[%s8887_s13 + $0xd0] sm:$0xff] }
 0x171   : > { %v2392_v53 = vpop.f32.mrf.mxu0  ;;  %v2433_v54 = vpop.f32.mrf.mxu1  ;;  %5057 = vmatprep.subr.mxu1 %v4252_v20  ;;  %5127 = vmatprep.subr.mxu0 %v4254_v45  ;;  %v4260_v45 = vld [vmem:[%s8887_s13 + $0x3f8] sm:$0xff] }
 0x172   : > { %4953 = vmatprep.mubr.f32.mxu1 %v4051_v49  ;;  %5023 = vmatprep.mubr.f32.mxu0 %v4053_v50 }
 0x173   : > { %v2469_v62 = vpop.f32.mrf.mxu0  ;;  %4954 = vmatmul.mubr.f32.vlgmr.msra.gmra.mxu1 %v4050_v52  ;;  %v2510_v63 = vpop.f32.mrf.mxu1  ;;  %5024 = vmatmul.mubr.f32.vlgmr.msra.gmra.mxu0 %v4052_v46  ;;  %v4262_v46 = vld [vmem:[%s8887_s13 + $0x408] sm:$0xff]  ;;  %v674_v52 = vrot.slane %v9373_v9, %v9278_v34 }
 0x174   : > { %v2511_v0 = vadd.f32 %v2510_v63, %v642_v51  ;;  %5058 = vmatpush1.xpose.msra.mxu1 %v4251_v56  ;;  %5128 = vmatpush1.xpose.msra.mxu0 %v4253_v57  ;;  %v2470_v1 = vadd.f32 %v2469_v62, %v634_v55  ;;  %v666_v56 = vrot.slane %v9373_v9, %v9281_v39  ;;  %v4259_v57 = vld [vmem:[%s8887_s13 + $0x3f0] sm:$0xff]  ;;  %v4164_v62 = vld [vmem:[%s8887_s13 + $0xf8] sm:$0xff] }
 0x175   : > { %v2471_v2 = vpop.f32.mrf.mxu0  ;;  %v2512_v4 = vpop.f32.mrf.mxu1  ;;  %5059 = vmatprep.subr.mxu1 %v4154_v60  ;;  %5129 = vmatprep.subr.mxu0 %v4156_v61  ;;  %v678_v60 = vrot.slane %v9373_v9, %v9286_v44  ;;  %v4162_v61 = vld [vmem:[%s8887_s13 + $0xe8] sm:$0xff] }
 0x176   : > { %v2472_v7 = vadd.f32 %v2471_v2, %v638_v58  ;;  %v2513_v8 = vadd.f32 %v2512_v4, %v646_v59  ;;  %v4056_v13 = vmax.f32 %v2511_v0, 0.0  ;;  %v4054_v21 = vmax.f32 %v2470_v1, 0.0  ;;  %v4261_v58 = vld [vmem:[%s8887_s13 + $0x400] sm:$0xff] }
 0x177   : > { %v2473_v14 = vpop.f32.mrf.mxu0  ;;  %v2514_v15 = vpop.f32.mrf.mxu1  ;;  %v670_v59 = vrot.slane %v9373_v9, %v9283_v42 }
 0x178   : > { %v4055_v16 = vmax.f32 %v2472_v7, 0.0  ;;  %v4057_v10 = vmax.f32 %v2513_v8, 0.0  ;;  %5060 = vmatpush1.xpose.msra.mxu1 %v4153_v5  ;;  %5130 = vmatpush1.xpose.msra.mxu0 %v4155_v6  ;;  %v4161_v6 = vld [vmem:[%s8887_s13 + $0xe0] sm:$0xff]  ;;  %v4163_v7 = vld [vmem:[%s8887_s13 + $0xf0] sm:$0xff] }
 0x179   : > { %v2474_v24 = vpop.f32.mrf.mxu0  ;;  %v2515_v25 = vpop.f32.mrf.mxu1  ;;  %5197 = vmatprep.subr.mxu1 %v4256_v11  ;;  %5267 = vmatprep.subr.mxu0 %v4258_v12  ;;  %v9408_v11 = vld [vmem:[%s8881_s16 + $0x20] sm:$0xff] }
 0x17a   : > { %5093 = vmatprep.mubr.f32.mxu1 %v4055_v16  ;;  %5163 = vmatprep.mubr.f32.mxu0 %v4057_v10  ;;  %v4264_v12 = vld [vmem:[%s8887_s13 + $0x418] sm:$0xff] }
 0x17b   : > { %v2551_v32 = vpop.f32.mrf.mxu0  ;;  %5094 = vmatmul.mubr.f32.vlgmr.msra.gmra.mxu1 %v4054_v21  ;;  %v2592_v33 = vpop.f32.mrf.mxu1  ;;  %5164 = vmatmul.mubr.f32.vlgmr.msra.gmra.mxu0 %v4056_v13  ;;  %v4266_v13 = vld [vmem:[%s8887_s13 + $0x428] sm:$0xff]  ;;  %v690_v21 = vrot.slane %v9408_v11, %v9252_v17 }
 0x17c   : > { %v2593_v35 = vadd.f32 %v2592_v33, %v658_v19  ;;  %5198 = vmatpush1.xpose.msra.mxu1 %v4255_v26  ;;  %5268 = vmatpush1.xpose.msra.mxu0 %v4257_v27  ;;  %v2552_v36 = vadd.f32 %v2551_v32, %v650_v3  ;;  %v682_v26 = vrot.slane %v9408_v11, %v9254_v18  ;;  %v4263_v27 = vld [vmem:[%s8887_s13 + $0x410] sm:$0xff]  ;;  %v4168_v32 = vld [vmem:[%s8887_s13 + $0x118] sm:$0xff] }
 0x17d   : > { %v2553_v37 = vpop.f32.mrf.mxu0  ;;  %v2594_v38 = vpop.f32.mrf.mxu1  ;;  %5199 = vmatprep.subr.mxu1 %v4158_v30  ;;  %5269 = vmatprep.subr.mxu0 %v4160_v31  ;;  %v694_v30 = vrot.slane %v9408_v11, %v9262_v23  ;;  %v4166_v31 = vld [vmem:[%s8887_s13 + $0x108] sm:$0xff] }
 0x17e   : > { %v2554_v43 = vadd.f32 %v2553_v37, %v654_v28  ;;  %v2595_v20 = vadd.f32 %v2594_v38, %v662_v29  ;;  %v4060_v47 = vmax.f32 %v2593_v35, 0.0  ;;  %v4058_v53 = vmax.f32 %v2552_v36, 0.0  ;;  %v4265_v28 = vld [vmem:[%s8887_s13 + $0x420] sm:$0xff] }
 0x17f   : > { %v2555_v48 = vpop.f32.mrf.mxu0  ;;  %v2596_v49 = vpop.f32.mrf.mxu1  ;;  %v686_v29 = vrot.slane %v9408_v11, %v9260_v22 }
 0x180   : > { %v4059_v50 = vmax.f32 %v2554_v43, 0.0  ;;  %v4061_v51 = vmax.f32 %v2595_v20, 0.0  ;;  %5200 = vmatpush1.xpose.msra.mxu1 %v4157_v40  ;;  %5270 = vmatpush1.xpose.msra.mxu0 %v4159_v41  ;;  %v4165_v41 = vld [vmem:[%s8887_s13 + $0x100] sm:$0xff]  ;;  %v4167_v43 = vld [vmem:[%s8887_s13 + $0x110] sm:$0xff] }
 0x181   : > { %v2556_v54 = vpop.f32.mrf.mxu0  ;;  %v2597_v55 = vpop.f32.mrf.mxu1  ;;  %5337 = vmatprep.subr.mxu1 %v4260_v45  ;;  %5407 = vmatprep.subr.mxu0 %v4262_v46  ;;  %v4268_v46 = vld [vmem:[%s8887_s13 + $0x438] sm:$0xff] }
 0x182   : > { %5233 = vmatprep.mubr.f32.mxu1 %v4059_v50  ;;  %5303 = vmatprep.mubr.f32.mxu0 %v4061_v51 }
 0x183   : > { %v2633_v63 = vpop.f32.mrf.mxu0  ;;  %5234 = vmatmul.mubr.f32.vlgmr.msra.gmra.mxu1 %v4058_v53  ;;  %v2674_v0 = vpop.f32.mrf.mxu1  ;;  %5304 = vmatmul.mubr.f32.vlgmr.msra.gmra.mxu0 %v4060_v47  ;;  %v4270_v47 = vld [vmem:[%s8887_s13 + $0x448] sm:$0xff]  ;;  %v706_v53 = vrot.slane %v9408_v11, %v9278_v34 }
 0x184   : > { %v2675_v1 = vadd.f32 %v2674_v0, %v674_v52  ;;  %5338 = vmatpush1.xpose.msra.mxu1 %v4259_v57  ;;  %5408 = vmatpush1.xpose.msra.mxu0 %v4261_v58  ;;  %v2634_v2 = vadd.f32 %v2633_v63, %v666_v56  ;;  %v698_v57 = vrot.slane %v9408_v11, %v9281_v39  ;;  %v4267_v58 = vld [vmem:[%s8887_s13 + $0x430] sm:$0xff]  ;;  %v4172_v63 = vld [vmem:[%s8887_s13 + $0x138] sm:$0xff] }
 0x185   : > { %v2635_v4 = vpop.f32.mrf.mxu0  ;;  %v2676_v5 = vpop.f32.mrf.mxu1  ;;  %5339 = vmatprep.subr.mxu1 %v4162_v61  ;;  %5409 = vmatprep.subr.mxu0 %v4164_v62  ;;  %v710_v61 = vrot.slane %v9408_v11, %v9286_v44  ;;  %v4170_v62 = vld [vmem:[%s8887_s13 + $0x128] sm:$0xff] }
 0x186   : > { %v2636_v8 = vadd.f32 %v2635_v4, %v670_v59  ;;  %v2677_v9 = vadd.f32 %v2676_v5, %v678_v60  ;;  %v4064_v14 = vmax.f32 %v2675_v1, 0.0  ;;  %v4062_v24 = vmax.f32 %v2634_v2, 0.0  ;;  %v4269_v59 = vld [vmem:[%s8887_s13 + $0x440] sm:$0xff] }
 0x187   : > { %v2637_v15 = vpop.f32.mrf.mxu0  ;;  %v2678_v16 = vpop.f32.mrf.mxu1  ;;  %v702_v60 = vrot.slane %v9408_v11, %v9283_v42 }
 0x188   : > { %v4063_v10 = vmax.f32 %v2636_v8, 0.0  ;;  %v4065_v19 = vmax.f32 %v2677_v9, 0.0  ;;  %5340 = vmatpush1.xpose.msra.mxu1 %v4161_v6  ;;  %5410 = vmatpush1.xpose.msra.mxu0 %v4163_v7  ;;  %v4169_v7 = vld [vmem:[%s8887_s13 + $0x120] sm:$0xff]  ;;  %v4171_v8 = vld [vmem:[%s8887_s13 + $0x130] sm:$0xff] }
 0x189   : > { %v2638_v25 = vpop.f32.mrf.mxu0  ;;  %v2679_v3 = vpop.f32.mrf.mxu1  ;;  %5477 = vmatprep.subr.mxu1 %v4264_v12  ;;  %5547 = vmatprep.subr.mxu0 %v4266_v13  ;;  %v9443_v12 = vld [vmem:[%s8881_s16 + $0x28] sm:$0xff]  ;;  %v4272_v13 = vld [vmem:[%s8887_s13 + $0x458] sm:$0xff] }
 0x18a   : > { %5373 = vmatprep.mubr.f32.mxu1 %v4063_v10  ;;  %5443 = vmatprep.mubr.f32.mxu0 %v4065_v19 }
 0x18b   : > { %v2715_v33 = vpop.f32.mrf.mxu0  ;;  %5374 = vmatmul.mubr.f32.vlgmr.msra.gmra.mxu1 %v4062_v24  ;;  %v2756_v35 = vpop.f32.mrf.mxu1  ;;  %5444 = vmatmul.mubr.f32.vlgmr.msra.gmra.mxu0 %v4064_v14  ;;  %v4274_v14 = vld [vmem:[%s8887_s13 + $0x468] sm:$0xff]  ;;  %v722_v24 = vrot.slane %v9443_v12, %v9252_v17 }
 0x18c   : > { %v2757_v36 = vadd.f32 %v2756_v35, %v690_v21  ;;  %5478 = vmatpush1.xpose.msra.mxu1 %v4263_v27  ;;  %5548 = vmatpush1.xpose.msra.mxu0 %v4265_v28  ;;  %v2716_v37 = vadd.f32 %v2715_v33, %v682_v26  ;;  %v714_v27 = vrot.slane %v9443_v12, %v9254_v18  ;;  %v4271_v28 = vld [vmem:[%s8887_s13 + $0x450] sm:$0xff]  ;;  %v4176_v33 = vld [vmem:[%s8887_s13 + $0x158] sm:$0xff] }
 0x18d   : > { %v2717_v38 = vpop.f32.mrf.mxu0  ;;  %v2758_v40 = vpop.f32.mrf.mxu1  ;;  %5479 = vmatprep.subr.mxu1 %v4166_v31  ;;  %5549 = vmatprep.subr.mxu0 %v4168_v32  ;;  %v726_v31 = vrot.slane %v9443_v12, %v9262_v23  ;;  %v4174_v32 = vld [vmem:[%s8887_s13 + $0x148] sm:$0xff] }
 0x18e   : > { %v2718_v20 = vadd.f32 %v2717_v38, %v686_v29  ;;  %v2759_v45 = vadd.f32 %v2758_v40, %v694_v30  ;;  %v4068_v48 = vmax.f32 %v2757_v36, 0.0  ;;  %v4066_v54 = vmax.f32 %v2716_v37, 0.0  ;;  %v4273_v29 = vld [vmem:[%s8887_s13 + $0x460] sm:$0xff] }
 0x18f   : > { %v2719_v49 = vpop.f32.mrf.mxu0  ;;  %v2760_v50 = vpop.f32.mrf.mxu1  ;;  %v718_v30 = vrot.slane %v9443_v12, %v9260_v22 }
 0x190   : > { %v4067_v51 = vmax.f32 %v2718_v20, 0.0  ;;  %v4069_v52 = vmax.f32 %v2759_v45, 0.0  ;;  %5480 = vmatpush1.xpose.msra.mxu1 %v4165_v41  ;;  %5550 = vmatpush1.xpose.msra.mxu0 %v4167_v43  ;;  %v4173_v43 = vld [vmem:[%s8887_s13 + $0x140] sm:$0xff]  ;;  %v4175_v20 = vld [vmem:[%s8887_s13 + $0x150] sm:$0xff] }
 0x191   : > { %v2720_v55 = vpop.f32.mrf.mxu0  ;;  %v2761_v56 = vpop.f32.mrf.mxu1  ;;  %5617 = vmatprep.subr.mxu1 %v4268_v46  ;;  %5687 = vmatprep.subr.mxu0 %v4270_v47  ;;  %v4276_v47 = vld [vmem:[%s8887_s13 + $0x478] sm:$0xff] }
 0x192   : > { %5513 = vmatprep.mubr.f32.mxu1 %v4067_v51  ;;  %5583 = vmatprep.mubr.f32.mxu0 %v4069_v52 }
 0x193   : > { %v2797_v0 = vpop.f32.mrf.mxu0  ;;  %5514 = vmatmul.mubr.f32.vlgmr.msra.gmra.mxu1 %v4066_v54  ;;  %v2838_v1 = vpop.f32.mrf.mxu1  ;;  %5584 = vmatmul.mubr.f32.vlgmr.msra.gmra.mxu0 %v4068_v48  ;;  %v4278_v48 = vld [vmem:[%s8887_s13 + $0x488] sm:$0xff]  ;;  %v738_v54 = vrot.slane %v9443_v12, %v9278_v34 }
 0x194   : > { %v2839_v2 = vadd.f32 %v2838_v1, %v706_v53  ;;  %5618 = vmatpush1.xpose.msra.mxu1 %v4267_v58  ;;  %5688 = vmatpush1.xpose.msra.mxu0 %v4269_v59  ;;  %v2798_v4 = vadd.f32 %v2797_v0, %v698_v57  ;;  %v730_v58 = vrot.slane %v9443_v12, %v9281_v39  ;;  %v4275_v59 = vld [vmem:[%s8887_s13 + $0x470] sm:$0xff]  ;;  %v4180_v0 = vld [vmem:[%s8887_s13 + $0x178] sm:$0xff] }
 0x195   : > { %v2799_v5 = vpop.f32.mrf.mxu0  ;;  %v2840_v6 = vpop.f32.mrf.mxu1  ;;  %5619 = vmatprep.subr.mxu1 %v4170_v62  ;;  %5689 = vmatprep.subr.mxu0 %v4172_v63  ;;  %v742_v62 = vrot.slane %v9443_v12, %v9286_v44  ;;  %v4178_v63 = vld [vmem:[%s8887_s13 + $0x168] sm:$0xff] }
 0x196   : > { %v2800_v9 = vadd.f32 %v2799_v5, %v702_v60  ;;  %v2841_v11 = vadd.f32 %v2840_v6, %v710_v61  ;;  %v4072_v15 = vmax.f32 %v2839_v2, 0.0  ;;  %v4070_v25 = vmax.f32 %v2798_v4, 0.0  ;;  %v4277_v60 = vld [vmem:[%s8887_s13 + $0x480] sm:$0xff] }
 0x197   : > { %v2801_v16 = vpop.f32.mrf.mxu0  ;;  %v2842_v10 = vpop.f32.mrf.mxu1  ;;  %v734_v61 = vrot.slane %v9443_v12, %v9283_v42 }
 0x198   : > { %v4071_v19 = vmax.f32 %v2800_v9, 0.0  ;;  %v4073_v21 = vmax.f32 %v2841_v11, 0.0  ;;  %5620 = vmatpush1.xpose.msra.mxu1 %v4169_v7  ;;  %5690 = vmatpush1.xpose.msra.mxu0 %v4171_v8  ;;  %v4177_v8 = vld [vmem:[%s8887_s13 + $0x160] sm:$0xff]  ;;  %v4179_v9 = vld [vmem:[%s8887_s13 + $0x170] sm:$0xff] }
 0x199   : > { %v2802_v3 = vpop.f32.mrf.mxu0  ;;  %v2843_v26 = vpop.f32.mrf.mxu1  ;;  %5757 = vmatprep.subr.mxu1 %v4272_v13  ;;  %5827 = vmatprep.subr.mxu0 %v4274_v14  ;;  %v9478_v13 = vld [vmem:[%s8881_s16 + $0x30] sm:$0xff]  ;;  %v4280_v14 = vld [vmem:[%s8887_s13 + $0x498] sm:$0xff] }
 0x19a   : > { %5653 = vmatprep.mubr.f32.mxu1 %v4071_v19  ;;  %5723 = vmatprep.mubr.f32.mxu0 %v4073_v21 }
 0x19b   : > { %v2879_v35 = vpop.f32.mrf.mxu0  ;;  %5654 = vmatmul.mubr.f32.vlgmr.msra.gmra.mxu1 %v4070_v25  ;;  %v2920_v36 = vpop.f32.mrf.mxu1  ;;  %5724 = vmatmul.mubr.f32.vlgmr.msra.gmra.mxu0 %v4072_v15  ;;  %v4282_v15 = vld [vmem:[%s8887_s13 + $0x4a8] sm:$0xff]  ;;  %v754_v25 = vrot.slane %v9478_v13, %v9252_v17 }
 0x19c   : > { %v2921_v37 = vadd.f32 %v2920_v36, %v722_v24  ;;  %5758 = vmatpush1.xpose.msra.mxu1 %v4271_v28  ;;  %5828 = vmatpush1.xpose.msra.mxu0 %v4273_v29  ;;  %v2880_v38 = vadd.f32 %v2879_v35, %v714_v27  ;;  %v746_v28 = vrot.slane %v9478_v13, %v9254_v18  ;;  %v4279_v29 = vld [vmem:[%s8887_s13 + $0x490] sm:$0xff]  ;;  %v4184_v35 = vld [vmem:[%s8887_s13 + $0x198] sm:$0xff] }
 0x19d   : > { %v2881_v40 = vpop.f32.mrf.mxu0  ;;  %v2922_v41 = vpop.f32.mrf.mxu1  ;;  %5759 = vmatprep.subr.mxu1 %v4174_v32  ;;  %5829 = vmatprep.subr.mxu0 %v4176_v33  ;;  %v758_v32 = vrot.slane %v9478_v13, %v9262_v23  ;;  %v4182_v33 = vld [vmem:[%s8887_s13 + $0x188] sm:$0xff] }
 0x19e   : > { %v2882_v45 = vadd.f32 %v2881_v40, %v718_v30  ;;  %v2923_v46 = vadd.f32 %v2922_v41, %v726_v31  ;;  %v4076_v49 = vmax.f32 %v2921_v37, 0.0  ;;  %v4074_v55 = vmax.f32 %v2880_v38, 0.0  ;;  %v4281_v30 = vld [vmem:[%s8887_s13 + $0x4a0] sm:$0xff] }
 0x19f   : > { %v2883_v50 = vpop.f32.mrf.mxu0  ;;  %v2924_v51 = vpop.f32.mrf.mxu1  ;;  %v750_v31 = vrot.slane %v9478_v13, %v9260_v22 }
 0x1a0   : > { %v4075_v52 = vmax.f32 %v2882_v45, 0.0  ;;  %v4077_v53 = vmax.f32 %v2923_v46, 0.0  ;;  %5760 = vmatpush1.xpose.msra.mxu1 %v4173_v43  ;;  %5830 = vmatpush1.xpose.msra.mxu0 %v4175_v20  ;;  %v4181_v20 = vld [vmem:[%s8887_s13 + $0x180] sm:$0xff]  ;;  %v4183_v45 = vld [vmem:[%s8887_s13 + $0x190] sm:$0xff] }
 0x1a1   : > { %v2884_v56 = vpop.f32.mrf.mxu0  ;;  %v2925_v57 = vpop.f32.mrf.mxu1  ;;  %5897 = vmatprep.subr.mxu1 %v4276_v47  ;;  %5967 = vmatprep.subr.mxu0 %v4278_v48  ;;  %v4284_v48 = vld [vmem:[%s8887_s13 + $0x4b8] sm:$0xff] }
 0x1a2   : > { %5793 = vmatprep.mubr.f32.mxu1 %v4075_v52  ;;  %5863 = vmatprep.mubr.f32.mxu0 %v4077_v53 }
 0x1a3   : > { %v2961_v1 = vpop.f32.mrf.mxu0  ;;  %5794 = vmatmul.mubr.f32.vlgmr.msra.gmra.mxu1 %v4074_v55  ;;  %v3002_v2 = vpop.f32.mrf.mxu1  ;;  %5864 = vmatmul.mubr.f32.vlgmr.msra.gmra.mxu0 %v4076_v49  ;;  %v4286_v49 = vld [vmem:[%s8887_s13 + $0x4c8] sm:$0xff]  ;;  %v770_v55 = vrot.slane %v9478_v13, %v9278_v34 }
 0x1a4   : > { %v3003_v4 = vadd.f32 %v3002_v2, %v738_v54  ;;  %5898 = vmatpush1.xpose.msra.mxu1 %v4275_v59  ;;  %5968 = vmatpush1.xpose.msra.mxu0 %v4277_v60  ;;  %v2962_v5 = vadd.f32 %v2961_v1, %v730_v58  ;;  %v762_v59 = vrot.slane %v9478_v13, %v9281_v39  ;;  %v4283_v60 = vld [vmem:[%s8887_s13 + $0x4b0] sm:$0xff]  ;;  %v4188_v1 = vld [vmem:[%s8887_s13 + $0x1b8] sm:$0xff] }
 0x1a5   : > { %v2963_v6 = vpop.f32.mrf.mxu0  ;;  %v3004_v7 = vpop.f32.mrf.mxu1  ;;  %5899 = vmatprep.subr.mxu1 %v4178_v63  ;;  %5969 = vmatprep.subr.mxu0 %v4180_v0  ;;  %v774_v63 = vrot.slane %v9478_v13, %v9286_v44  ;;  %v4186_v0 = vld [vmem:[%s8887_s13 + $0x1a8] sm:$0xff] }
 0x1a6   : > { %v2964_v11 = vadd.f32 %v2963_v6, %v734_v61  ;;  %v3005_v12 = vadd.f32 %v3004_v7, %v742_v62  ;;  %v4080_v16 = vmax.f32 %v3003_v4, 0.0  ;;  %v4078_v3 = vmax.f32 %v2962_v5, 0.0  ;;  %v4285_v61 = vld [vmem:[%s8887_s13 + $0x4c0] sm:$0xff] }
 0x1a7   : > { %v2965_v10 = vpop.f32.mrf.mxu0  ;;  %v3006_v19 = vpop.f32.mrf.mxu1  ;;  %v766_v62 = vrot.slane %v9478_v13, %v9283_v42 }
 0x1a8   : > { %v4079_v21 = vmax.f32 %v2964_v11, 0.0  ;;  %v4081_v24 = vmax.f32 %v3005_v12, 0.0  ;;  %5900 = vmatpush1.xpose.msra.mxu1 %v4177_v8  ;;  %5970 = vmatpush1.xpose.msra.mxu0 %v4179_v9  ;;  %v4185_v9 = vld [vmem:[%s8887_s13 + $0x1a0] sm:$0xff]  ;;  %v4187_v11 = vld [vmem:[%s8887_s13 + $0x1b0] sm:$0xff] }
 0x1a9   : > { %v2966_v26 = vpop.f32.mrf.mxu0  ;;  %v3007_v27 = vpop.f32.mrf.mxu1  ;;  %6037 = vmatprep.subr.mxu1 %v4280_v14  ;;  %6107 = vmatprep.subr.mxu0 %v4282_v15  ;;  %v9513_v14 = vld [vmem:[%s8881_s16 + $0x38] sm:$0xff] }
 0x1aa   : > { %5933 = vmatprep.mubr.f32.mxu1 %v4079_v21  ;;  %6003 = vmatprep.mubr.f32.mxu0 %v4081_v24  ;;  %v4288_v15 = vld [vmem:[%s8887_s13 + $0x4d8] sm:$0xff] }
 0x1ab   : > { %v3043_v36 = vpop.f32.mrf.mxu0  ;;  %5934 = vmatmul.mubr.f32.vlgmr.msra.gmra.mxu1 %v4078_v3  ;;  %v3084_v37 = vpop.f32.mrf.mxu1  ;;  %6004 = vmatmul.mubr.f32.vlgmr.msra.gmra.mxu0 %v4080_v16  ;;  %v4290_v16 = vld [vmem:[%s8887_s13 + $0x4e8] sm:$0xff]  ;;  %v786_v3 = vrot.slane %v9513_v14, %v9252_v17 }
 0x1ac   : > { %v3085_v38 = vadd.f32 %v3084_v37, %v754_v25  ;;  %6038 = vmatpush1.xpose.msra.mxu1 %v4279_v29  ;;  %6108 = vmatpush1.xpose.msra.mxu0 %v4281_v30  ;;  %v3044_v40 = vadd.f32 %v3043_v36, %v746_v28  ;;  %v778_v29 = vrot.slane %v9513_v14, %v9254_v18  ;;  %v4287_v30 = vld [vmem:[%s8887_s13 + $0x4d0] sm:$0xff]  ;;  %v4192_v36 = vld [vmem:[%s8887_s13 + $0x1d8] sm:$0xff] }
 0x1ad   : > { %v3045_v41 = vpop.f32.mrf.mxu0  ;;  %v3086_v43 = vpop.f32.mrf.mxu1  ;;  %6039 = vmatprep.subr.mxu1 %v4182_v33  ;;  %6109 = vmatprep.subr.mxu0 %v4184_v35  ;;  %v790_v33 = vrot.slane %v9513_v14, %v9262_v23  ;;  %v4190_v35 = vld [vmem:[%s8887_s13 + $0x1c8] sm:$0xff] }
 0x1ae   : > { %v3046_v46 = vadd.f32 %v3045_v41, %v750_v31  ;;  %v3087_v47 = vadd.f32 %v3086_v43, %v758_v32  ;;  %v4084_v50 = vmax.f32 %v3085_v38, 0.0  ;;  %v4082_v56 = vmax.f32 %v3044_v40, 0.0  ;;  %v4289_v31 = vld [vmem:[%s8887_s13 + $0x4e0] sm:$0xff] }
 0x1af   : > { %v3047_v51 = vpop.f32.mrf.mxu0  ;;  %v3088_v52 = vpop.f32.mrf.mxu1  ;;  %v782_v32 = vrot.slane %v9513_v14, %v9260_v22 }
 0x1b0   : > { %v4083_v53 = vmax.f32 %v3046_v46, 0.0  ;;  %v4085_v54 = vmax.f32 %v3087_v47, 0.0  ;;  %6040 = vmatpush1.xpose.msra.mxu1 %v4181_v20  ;;  %6110 = vmatpush1.xpose.msra.mxu0 %v4183_v45  ;;  %v4189_v45 = vld [vmem:[%s8887_s13 + $0x1c0] sm:$0xff]  ;;  %v4191_v46 = vld [vmem:[%s8887_s13 + $0x1d0] sm:$0xff] }
 0x1b1   : > { %v3048_v57 = vpop.f32.mrf.mxu0  ;;  %v3089_v58 = vpop.f32.mrf.mxu1  ;;  %6177 = vmatprep.subr.mxu1 %v4284_v48  ;;  %6247 = vmatprep.subr.mxu0 %v4286_v49  ;;  %v4292_v49 = vld [vmem:[%s8887_s13 + $0x4f8] sm:$0xff] }
 0x1b2   : > { %6073 = vmatprep.mubr.f32.mxu1 %v4083_v53  ;;  %6143 = vmatprep.mubr.f32.mxu0 %v4085_v54 }
 0x1b3   : > { %v3125_v2 = vpop.f32.mrf.mxu0  ;;  %6074 = vmatmul.mubr.f32.vlgmr.msra.gmra.mxu1 %v4082_v56  ;;  %v3166_v4 = vpop.f32.mrf.mxu1  ;;  %6144 = vmatmul.mubr.f32.vlgmr.msra.gmra.mxu0 %v4084_v50  ;;  %v4294_v50 = vld [vmem:[%s8887_s13 + $0x508] sm:$0xff]  ;;  %v802_v56 = vrot.slane %v9513_v14, %v9278_v34 }
 0x1b4   : > { %v3167_v5 = vadd.f32 %v3166_v4, %v770_v55  ;;  %6178 = vmatpush1.xpose.msra.mxu1 %v4283_v60  ;;  %6248 = vmatpush1.xpose.msra.mxu0 %v4285_v61  ;;  %v3126_v6 = vadd.f32 %v3125_v2, %v762_v59  ;;  %v794_v60 = vrot.slane %v9513_v14, %v9281_v39  ;;  %v4291_v61 = vld [vmem:[%s8887_s13 + $0x4f0] sm:$0xff]  ;;  %v4196_v2 = vld [vmem:[%s8887_s13 + $0x1f8] sm:$0xff] }
 0x1b5   : > { %v3127_v7 = vpop.f32.mrf.mxu0  ;;  %v3168_v8 = vpop.f32.mrf.mxu1  ;;  %6179 = vmatprep.subr.mxu1 %v4186_v0  ;;  %6249 = vmatprep.subr.mxu0 %v4188_v1  ;;  %v806_v0 = vrot.slane %v9513_v14, %v9286_v44  ;;  %v4194_v1 = vld [vmem:[%s8887_s13 + $0x1e8] sm:$0xff] }
 0x1b6   : > { %v3128_v12 = vadd.f32 %v3127_v7, %v766_v62  ;;  %v3169_v13 = vadd.f32 %v3168_v8, %v774_v63  ;;  %v4088_v10 = vmax.f32 %v3167_v5, 0.0  ;;  %v4086_v26 = vmax.f32 %v3126_v6, 0.0  ;;  %v4293_v62 = vld [vmem:[%s8887_s13 + $0x500] sm:$0xff] }
 0x1b7   : > { %v3129_v19 = vpop.f32.mrf.mxu0  ;;  %v3170_v21 = vpop.f32.mrf.mxu1  ;;  %v798_v63 = vrot.slane %v9513_v14, %v9283_v42 }
 0x1b8   : > { %v4087_v24 = vmax.f32 %v3128_v12, 0.0  ;;  %v4089_v25 = vmax.f32 %v3169_v13, 0.0  ;;  %6180 = vmatpush1.xpose.msra.mxu1 %v4185_v9  ;;  %6250 = vmatpush1.xpose.msra.mxu0 %v4187_v11  ;;  %v4193_v11 = vld [vmem:[%s8887_s13 + $0x1e0] sm:$0xff]  ;;  %v4195_v12 = vld [vmem:[%s8887_s13 + $0x1f0] sm:$0xff] }
 0x1b9   : > { %v3130_v27 = vpop.f32.mrf.mxu0  ;;  %v3171_v28 = vpop.f32.mrf.mxu1  ;;  %6317 = vmatprep.subr.mxu1 %v4288_v15  ;;  %6387 = vmatprep.subr.mxu0 %v4290_v16  ;;  %v9548_v15 = vld [vmem:[%s8881_s16 + $0x40] sm:$0xff] }
 0x1ba   : > { %6213 = vmatprep.mubr.f32.mxu1 %v4087_v24  ;;  %6283 = vmatprep.mubr.f32.mxu0 %v4089_v25  ;;  %v4296_v16 = vld [vmem:[%s8887_s13 + $0x518] sm:$0xff] }
 0x1bb   : > { %v3207_v37 = vpop.f32.mrf.mxu0  ;;  %6214 = vmatmul.mubr.f32.vlgmr.msra.gmra.mxu1 %v4086_v26  ;;  %v3248_v38 = vpop.f32.mrf.mxu1  ;;  %6284 = vmatmul.mubr.f32.vlgmr.msra.gmra.mxu0 %v4088_v10  ;;  %v4298_v10 = vld [vmem:[%s8887_s13 + $0x528] sm:$0xff]  ;;  %v818_v26 = vrot.slane %v9548_v15, %v9252_v17 }
 0x1bc   : > { %v3249_v40 = vadd.f32 %v3248_v38, %v786_v3  ;;  %6318 = vmatpush1.xpose.msra.mxu1 %v4287_v30  ;;  %6388 = vmatpush1.xpose.msra.mxu0 %v4289_v31  ;;  %v3208_v41 = vadd.f32 %v3207_v37, %v778_v29  ;;  %v810_v30 = vrot.slane %v9548_v15, %v9254_v18  ;;  %v4295_v31 = vld [vmem:[%s8887_s13 + $0x510] sm:$0xff]  ;;  %v4200_v37 = vld [vmem:[%s8887_s13 + $0x218] sm:$0xff] }
 0x1bd   : > { %v3209_v43 = vpop.f32.mrf.mxu0  ;;  %v3250_v20 = vpop.f32.mrf.mxu1  ;;  %6319 = vmatprep.subr.mxu1 %v4190_v35  ;;  %6389 = vmatprep.subr.mxu0 %v4192_v36  ;;  %v822_v35 = vrot.slane %v9548_v15, %v9262_v23  ;;  %v4198_v36 = vld [vmem:[%s8887_s13 + $0x208] sm:$0xff] }
 0x1be   : > { %v3210_v47 = vadd.f32 %v3209_v43, %v782_v32  ;;  %v3251_v48 = vadd.f32 %v3250_v20, %v790_v33  ;;  %v4092_v51 = vmax.f32 %v3249_v40, 0.0  ;;  %v4090_v57 = vmax.f32 %v3208_v41, 0.0  ;;  %v4297_v32 = vld [vmem:[%s8887_s13 + $0x520] sm:$0xff] }
 0x1bf   : > { %v3211_v52 = vpop.f32.mrf.mxu0  ;;  %v3252_v53 = vpop.f32.mrf.mxu1  ;;  %v814_v33 = vrot.slane %v9548_v15, %v9260_v22 }
 0x1c0   : > { %v4091_v54 = vmax.f32 %v3210_v47, 0.0  ;;  %v4093_v55 = vmax.f32 %v3251_v48, 0.0  ;;  %6320 = vmatpush1.xpose.msra.mxu1 %v4189_v45  ;;  %6390 = vmatpush1.xpose.msra.mxu0 %v4191_v46  ;;  %v4197_v46 = vld [vmem:[%s8887_s13 + $0x200] sm:$0xff]  ;;  %v4199_v47 = vld [vmem:[%s8887_s13 + $0x210] sm:$0xff] }
 0x1c1   : > { %v3212_v58 = vpop.f32.mrf.mxu0  ;;  %v3253_v59 = vpop.f32.mrf.mxu1  ;;  %6457 = vmatprep.subr.mxu1 %v4292_v49  ;;  %6527 = vmatprep.subr.mxu0 %v4294_v50  ;;  %v4300_v50 = vld [vmem:[%s8887_s13 + $0x538] sm:$0xff] }
 0x1c2   : > { %6353 = vmatprep.mubr.f32.mxu1 %v4091_v54  ;;  %6423 = vmatprep.mubr.f32.mxu0 %v4093_v55 }
 0x1c3   : > { %v3289_v4 = vpop.f32.mrf.mxu0  ;;  %6354 = vmatmul.mubr.f32.vlgmr.msra.gmra.mxu1 %v4090_v57  ;;  %v3330_v5 = vpop.f32.mrf.mxu1  ;;  %6424 = vmatmul.mubr.f32.vlgmr.msra.gmra.mxu0 %v4092_v51  ;;  %v4302_v51 = vld [vmem:[%s8887_s13 + $0x548] sm:$0xff]  ;;  %v834_v57 = vrot.slane %v9548_v15, %v9278_v34 }
 0x1c4   : > { %v3331_v6 = vadd.f32 %v3330_v5, %v802_v56  ;;  %6458 = vmatpush1.xpose.msra.mxu1 %v4291_v61  ;;  %6528 = vmatpush1.xpose.msra.mxu0 %v4293_v62  ;;  %v3290_v7 = vadd.f32 %v3289_v4, %v794_v60  ;;  %v826_v61 = vrot.slane %v9548_v15, %v9281_v39  ;;  %v4299_v62 = vld [vmem:[%s8887_s13 + $0x530] sm:$0xff]  ;;  %v4204_v4 = vld [vmem:[%s8887_s13 + $0x238] sm:$0xff] }
 0x1c5   : > { %v3291_v8 = vpop.f32.mrf.mxu0  ;;  %v3332_v9 = vpop.f32.mrf.mxu1  ;;  %6459 = vmatprep.subr.mxu1 %v4194_v1  ;;  %6529 = vmatprep.subr.mxu0 %v4196_v2  ;;  %v838_v1 = vrot.slane %v9548_v15, %v9286_v44  ;;  %v4202_v2 = vld [vmem:[%s8887_s13 + $0x228] sm:$0xff] }
 0x1c6   : > { %v3292_v13 = vadd.f32 %v3291_v8, %v798_v63  ;;  %v3333_v14 = vadd.f32 %v3332_v9, %v806_v0  ;;  %v4096_v19 = vmax.f32 %v3331_v6, 0.0  ;;  %v4094_v27 = vmax.f32 %v3290_v7, 0.0  ;;  %v4301_v63 = vld [vmem:[%s8887_s13 + $0x540] sm:$0xff] }
 0x1c7   : > { %v3293_v21 = vpop.f32.mrf.mxu0  ;;  %v3334_v24 = vpop.f32.mrf.mxu1  ;;  %v830_v0 = vrot.slane %v9548_v15, %v9283_v42 }
 0x1c8   : > { %v4095_v25 = vmax.f32 %v3292_v13, 0.0  ;;  %v4097_v3 = vmax.f32 %v3333_v14, 0.0  ;;  %6460 = vmatpush1.xpose.msra.mxu1 %v4193_v11  ;;  %6530 = vmatpush1.xpose.msra.mxu0 %v4195_v12  ;;  %v4201_v12 = vld [vmem:[%s8887_s13 + $0x220] sm:$0xff]  ;;  %v4203_v13 = vld [vmem:[%s8887_s13 + $0x230] sm:$0xff] }
 0x1c9   : > { %v3294_v28 = vpop.f32.mrf.mxu0  ;;  %v3335_v29 = vpop.f32.mrf.mxu1  ;;  %6597 = vmatprep.subr.mxu1 %v4296_v16  ;;  %6667 = vmatprep.subr.mxu0 %v4298_v10  ;;  %v9583_v16 = vld [vmem:[%s8881_s16 + $0x48] sm:$0xff]  ;;  %v4304_v10 = vld [vmem:[%s8887_s13 + $0x558] sm:$0xff] }
 0x1ca   : > { %6493 = vmatprep.mubr.f32.mxu1 %v4095_v25  ;;  %6563 = vmatprep.mubr.f32.mxu0 %v4097_v3 }
 0x1cb   : > { %v3371_v38 = vpop.f32.mrf.mxu0  ;;  %6494 = vmatmul.mubr.f32.vlgmr.msra.gmra.mxu1 %v4094_v27  ;;  %v3412_v40 = vpop.f32.mrf.mxu1  ;;  %6564 = vmatmul.mubr.f32.vlgmr.msra.gmra.mxu0 %v4096_v19  ;;  %v4306_v19 = vld [vmem:[%s8887_s13 + $0x568] sm:$0xff]  ;;  %v850_v27 = vrot.slane %v9583_v16, %v9252_v17 }
 0x1cc   : > { %v3413_v41 = vadd.f32 %v3412_v40, %v818_v26  ;;  %6598 = vmatpush1.xpose.msra.mxu1 %v4295_v31  ;;  %6668 = vmatpush1.xpose.msra.mxu0 %v4297_v32  ;;  %v3372_v43 = vadd.f32 %v3371_v38, %v810_v30  ;;  %v842_v31 = vrot.slane %v9583_v16, %v9254_v18  ;;  %v4303_v32 = vld [vmem:[%s8887_s13 + $0x550] sm:$0xff]  ;;  %v4208_v38 = vld [vmem:[%s8887_s13 + $0x258] sm:$0xff] }
 0x1cd   : > { %v3373_v20 = vpop.f32.mrf.mxu0  ;;  %v3414_v45 = vpop.f32.mrf.mxu1  ;;  %6599 = vmatprep.subr.mxu1 %v4198_v36  ;;  %6669 = vmatprep.subr.mxu0 %v4200_v37  ;;  %v854_v36 = vrot.slane %v9583_v16, %v9262_v23  ;;  %v4206_v37 = vld [vmem:[%s8887_s13 + $0x248] sm:$0xff] }
 0x1ce   : > { %v3374_v48 = vadd.f32 %v3373_v20, %v814_v33  ;;  %v3415_v49 = vadd.f32 %v3414_v45, %v822_v35  ;;  %v4100_v52 = vmax.f32 %v3413_v41, 0.0  ;;  %v4098_v58 = vmax.f32 %v3372_v43, 0.0  ;;  %v4305_v33 = vld [vmem:[%s8887_s13 + $0x560] sm:$0xff] }
 0x1cf   : > { %v3375_v53 = vpop.f32.mrf.mxu0  ;;  %v3416_v54 = vpop.f32.mrf.mxu1  ;;  %v846_v35 = vrot.slane %v9583_v16, %v9260_v22 }
 0x1d0   : > { %v4099_v55 = vmax.f32 %v3374_v48, 0.0  ;;  %v4101_v56 = vmax.f32 %v3415_v49, 0.0  ;;  %6600 = vmatpush1.xpose.msra.mxu1 %v4197_v46  ;;  %6670 = vmatpush1.xpose.msra.mxu0 %v4199_v47  ;;  %v4205_v47 = vld [vmem:[%s8887_s13 + $0x240] sm:$0xff]  ;;  %v4207_v48 = vld [vmem:[%s8887_s13 + $0x250] sm:$0xff] }
 0x1d1   : > { %v3376_v59 = vpop.f32.mrf.mxu0  ;;  %v3417_v60 = vpop.f32.mrf.mxu1  ;;  %6737 = vmatprep.subr.mxu1 %v4300_v50  ;;  %6807 = vmatprep.subr.mxu0 %v4302_v51  ;;  %v4308_v51 = vld [vmem:[%s8887_s13 + $0x578] sm:$0xff] }
 0x1d2   : > { %6633 = vmatprep.mubr.f32.mxu1 %v4099_v55  ;;  %6703 = vmatprep.mubr.f32.mxu0 %v4101_v56 }
 0x1d3   : > { %v3453_v5 = vpop.f32.mrf.mxu0  ;;  %6634 = vmatmul.mubr.f32.vlgmr.msra.gmra.mxu1 %v4098_v58  ;;  %v3494_v6 = vpop.f32.mrf.mxu1  ;;  %6704 = vmatmul.mubr.f32.vlgmr.msra.gmra.mxu0 %v4100_v52  ;;  %v4310_v52 = vld [vmem:[%s8887_s13 + $0x588] sm:$0xff]  ;;  %v866_v58 = vrot.slane %v9583_v16, %v9278_v34 }
 0x1d4   : > { %v3495_v7 = vadd.f32 %v3494_v6, %v834_v57  ;;  %6738 = vmatpush1.xpose.msra.mxu1 %v4299_v62  ;;  %6808 = vmatpush1.xpose.msra.mxu0 %v4301_v63  ;;  %v3454_v8 = vadd.f32 %v3453_v5, %v826_v61  ;;  %v858_v62 = vrot.slane %v9583_v16, %v9281_v39  ;;  %v4307_v63 = vld [vmem:[%s8887_s13 + $0x570] sm:$0xff]  ;;  %v4212_v5 = vld [vmem:[%s8887_s13 + $0x278] sm:$0xff] }
 0x1d5   : > { %v3455_v9 = vpop.f32.mrf.mxu0  ;;  %v3496_v11 = vpop.f32.mrf.mxu1  ;;  %6739 = vmatprep.subr.mxu1 %v4202_v2  ;;  %6809 = vmatprep.subr.mxu0 %v4204_v4  ;;  %v870_v2 = vrot.slane %v9583_v16, %v9286_v44  ;;  %v4210_v4 = vld [vmem:[%s8887_s13 + $0x268] sm:$0xff] }
 0x1d6   : > { %v3456_v14 = vadd.f32 %v3455_v9, %v830_v0  ;;  %v3497_v15 = vadd.f32 %v3496_v11, %v838_v1  ;;  %v4104_v21 = vmax.f32 %v3495_v7, 0.0  ;;  %v4102_v28 = vmax.f32 %v3454_v8, 0.0  ;;  %v4309_v0 = vld [vmem:[%s8887_s13 + $0x580] sm:$0xff] }
 0x1d7   : > { %v3457_v24 = vpop.f32.mrf.mxu0  ;;  %v3498_v25 = vpop.f32.mrf.mxu1  ;;  %v862_v1 = vrot.slane %v9583_v16, %v9283_v42 }
 0x1d8   : > { %v4103_v3 = vmax.f32 %v3456_v14, 0.0  ;;  %v4105_v26 = vmax.f32 %v3497_v15, 0.0  ;;  %6740 = vmatpush1.xpose.msra.mxu1 %v4201_v12  ;;  %6810 = vmatpush1.xpose.msra.mxu0 %v4203_v13  ;;  %v4209_v13 = vld [vmem:[%s8887_s13 + $0x260] sm:$0xff]  ;;  %v4211_v14 = vld [vmem:[%s8887_s13 + $0x270] sm:$0xff] }
 0x1d9   : > { %v3458_v29 = vpop.f32.mrf.mxu0  ;;  %v3499_v30 = vpop.f32.mrf.mxu1  ;;  %6877 = vmatprep.subr.mxu1 %v4304_v10  ;;  %6947 = vmatprep.subr.mxu0 %v4306_v19  ;;  %v9618_v10 = vld [vmem:[%s8881_s16 + $0x50] sm:$0xff]  ;;  %v4312_v19 = vld [vmem:[%s8887_s13 + $0x598] sm:$0xff] }
 0x1da   : > { %6773 = vmatprep.mubr.f32.mxu1 %v4103_v3  ;;  %6843 = vmatprep.mubr.f32.mxu0 %v4105_v26 }
 0x1db   : > { %v3535_v40 = vpop.f32.mrf.mxu0  ;;  %6774 = vmatmul.mubr.f32.vlgmr.msra.gmra.mxu1 %v4102_v28  ;;  %v3576_v41 = vpop.f32.mrf.mxu1  ;;  %6844 = vmatmul.mubr.f32.vlgmr.msra.gmra.mxu0 %v4104_v21  ;;  %v4314_v21 = vld [vmem:[%s8887_s13 + $0x5a8] sm:$0xff]  ;;  %v882_v28 = vrot.slane %v9618_v10, %v9252_v17 }
 0x1dc   : > { %v3577_v43 = vadd.f32 %v3576_v41, %v850_v27  ;;  %6878 = vmatpush1.xpose.msra.mxu1 %v4303_v32  ;;  %6948 = vmatpush1.xpose.msra.mxu0 %v4305_v33  ;;  %v3536_v20 = vadd.f32 %v3535_v40, %v842_v31  ;;  %v874_v32 = vrot.slane %v9618_v10, %v9254_v18  ;;  %v4311_v33 = vld [vmem:[%s8887_s13 + $0x590] sm:$0xff]  ;;  %v4216_v40 = vld [vmem:[%s8887_s13 + $0x298] sm:$0xff] }
 0x1dd   : > { %v3537_v45 = vpop.f32.mrf.mxu0  ;;  %v3578_v46 = vpop.f32.mrf.mxu1  ;;  %6879 = vmatprep.subr.mxu1 %v4206_v37  ;;  %6949 = vmatprep.subr.mxu0 %v4208_v38  ;;  %v886_v37 = vrot.slane %v9618_v10, %v9262_v23  ;;  %v4214_v38 = vld [vmem:[%s8887_s13 + $0x288] sm:$0xff] }
 0x1de   : > { %v3538_v49 = vadd.f32 %v3537_v45, %v846_v35  ;;  %v3579_v50 = vadd.f32 %v3578_v46, %v854_v36  ;;  %v4108_v53 = vmax.f32 %v3577_v43, 0.0  ;;  %v4106_v59 = vmax.f32 %v3536_v20, 0.0  ;;  %v4313_v35 = vld [vmem:[%s8887_s13 + $0x5a0] sm:$0xff] }
 0x1df   : > { %v3539_v54 = vpop.f32.mrf.mxu0  ;;  %v3580_v55 = vpop.f32.mrf.mxu1  ;;  %v878_v36 = vrot.slane %v9618_v10, %v9260_v22 }
 0x1e0   : > { %v4107_v56 = vmax.f32 %v3538_v49, 0.0  ;;  %v4109_v57 = vmax.f32 %v3579_v50, 0.0  ;;  %6880 = vmatpush1.xpose.msra.mxu1 %v4205_v47  ;;  %6950 = vmatpush1.xpose.msra.mxu0 %v4207_v48  ;;  %v4213_v48 = vld [vmem:[%s8887_s13 + $0x280] sm:$0xff]  ;;  %v4215_v49 = vld [vmem:[%s8887_s13 + $0x290] sm:$0xff] }
 0x1e1   : > { %v3540_v60 = vpop.f32.mrf.mxu0  ;;  %v3581_v61 = vpop.f32.mrf.mxu1  ;;  %7017 = vmatprep.subr.mxu1 %v4308_v51  ;;  %7087 = vmatprep.subr.mxu0 %v4310_v52  ;;  %v4316_v52 = vld [vmem:[%s8887_s13 + $0x5b8] sm:$0xff] }
 0x1e2   : > { %6913 = vmatprep.mubr.f32.mxu1 %v4107_v56  ;;  %6983 = vmatprep.mubr.f32.mxu0 %v4109_v57 }
 0x1e3   : > { %v3617_v6 = vpop.f32.mrf.mxu0  ;;  %6914 = vmatmul.mubr.f32.vlgmr.msra.gmra.mxu1 %v4106_v59  ;;  %v3658_v7 = vpop.f32.mrf.mxu1  ;;  %6984 = vmatmul.mubr.f32.vlgmr.msra.gmra.mxu0 %v4108_v53  ;;  %v4318_v53 = vld [vmem:[%s8887_s13 + $0x5c8] sm:$0xff]  ;;  %v898_v59 = vrot.slane %v9618_v10, %v9278_v34 }
 0x1e4   : > { %v3659_v8 = vadd.f32 %v3658_v7, %v866_v58  ;;  %7018 = vmatpush1.xpose.msra.mxu1 %v4307_v63  ;;  %7088 = vmatpush1.xpose.msra.mxu0 %v4309_v0  ;;  %v3618_v9 = vadd.f32 %v3617_v6, %v858_v62  ;;  %v890_v63 = vrot.slane %v9618_v10, %v9281_v39  ;;  %v4315_v0 = vld [vmem:[%s8887_s13 + $0x5b0] sm:$0xff]  ;;  %v4220_v6 = vld [vmem:[%s8887_s13 + $0x2b8] sm:$0xff] }
 0x1e5   : > { %v3619_v11 = vpop.f32.mrf.mxu0  ;;  %v3660_v12 = vpop.f32.mrf.mxu1  ;;  %7019 = vmatprep.subr.mxu1 %v4210_v4  ;;  %7089 = vmatprep.subr.mxu0 %v4212_v5  ;;  %v902_v4 = vrot.slane %v9618_v10, %v9286_v44  ;;  %v4218_v5 = vld [vmem:[%s8887_s13 + $0x2a8] sm:$0xff] }
 0x1e6   : > { %v3620_v15 = vadd.f32 %v3619_v11, %v862_v1  ;;  %v3661_v16 = vadd.f32 %v3660_v12, %v870_v2  ;;  %v4112_v24 = vmax.f32 %v3659_v8, 0.0  ;;  %v4110_v29 = vmax.f32 %v3618_v9, 0.0  ;;  %v4317_v1 = vld [vmem:[%s8887_s13 + $0x5c0] sm:$0xff] }
 0x1e7   : > { %v3621_v25 = vpop.f32.mrf.mxu0  ;;  %v3662_v3 = vpop.f32.mrf.mxu1  ;;  %v894_v2 = vrot.slane %v9618_v10, %v9283_v42 }
 0x1e8   : > { %v4111_v26 = vmax.f32 %v3620_v15, 0.0  ;;  %v4113_v27 = vmax.f32 %v3661_v16, 0.0  ;;  %7020 = vmatpush1.xpose.msra.mxu1 %v4209_v13  ;;  %7090 = vmatpush1.xpose.msra.mxu0 %v4211_v14  ;;  %v4217_v14 = vld [vmem:[%s8887_s13 + $0x2a0] sm:$0xff]  ;;  %v4219_v15 = vld [vmem:[%s8887_s13 + $0x2b0] sm:$0xff] }
 0x1e9   : > { %v3622_v30 = vpop.f32.mrf.mxu0  ;;  %v3663_v31 = vpop.f32.mrf.mxu1  ;;  %7157 = vmatprep.subr.mxu1 %v4312_v19  ;;  %7227 = vmatprep.subr.mxu0 %v4314_v21  ;;  %v9653_v19 = vld [vmem:[%s8881_s16 + $0x58] sm:$0xff] }
 0x1ea   : > { %7053 = vmatprep.mubr.f32.mxu1 %v4111_v26  ;;  %7123 = vmatprep.mubr.f32.mxu0 %v4113_v27  ;;  %v4320_v21 = vld [vmem:[%s8887_s13 + $0x5d8] sm:$0xff] }
 0x1eb   : > { %v3699_v41 = vpop.f32.mrf.mxu0  ;;  %7054 = vmatmul.mubr.f32.vlgmr.msra.gmra.mxu1 %v4110_v29  ;;  %v3740_v43 = vpop.f32.mrf.mxu1  ;;  %7124 = vmatmul.mubr.f32.vlgmr.msra.gmra.mxu0 %v4112_v24  ;;  %v4322_v24 = vld [vmem:[%s8887_s13 + $0x5e8] sm:$0xff]  ;;  %v914_v29 = vrot.slane %v9653_v19, %v9252_v17 }
 0x1ec   : > { %v3741_v20 = vadd.f32 %v3740_v43, %v882_v28  ;;  %7158 = vmatpush1.xpose.msra.mxu1 %v4311_v33  ;;  %7228 = vmatpush1.xpose.msra.mxu0 %v4313_v35  ;;  %v3700_v45 = vadd.f32 %v3699_v41, %v874_v32  ;;  %v906_v33 = vrot.slane %v9653_v19, %v9254_v18  ;;  %v4319_v35 = vld [vmem:[%s8887_s13 + $0x5d0] sm:$0xff]  ;;  %v4222_v17 = vld [vmem:[%s8887_s13 + $0x2c8] sm:$0xff] }
 0x1ed   : > { %v3701_v46 = vpop.f32.mrf.mxu0  ;;  %v3742_v47 = vpop.f32.mrf.mxu1  ;;  %7159 = vmatprep.subr.mxu1 %v4214_v38  ;;  %7229 = vmatprep.subr.mxu0 %v4216_v40  ;;  %v918_v38 = vrot.slane %v9653_v19, %v9262_v23  ;;  %v4224_v40 = vld [vmem:[%s8887_s13 + $0x2d8] sm:$0xff] }
 0x1ee   : > { %v3702_v50 = vadd.f32 %v3701_v46, %v878_v36  ;;  %v3743_v51 = vadd.f32 %v3742_v47, %v886_v37  ;;  %v4116_v54 = vmax.f32 %v3741_v20, 0.0  ;;  %v4114_v60 = vmax.f32 %v3700_v45, 0.0  ;;  %v4321_v36 = vld [vmem:[%s8887_s13 + $0x5e0] sm:$0xff] }
 0x1ef   : > { %v3703_v55 = vpop.f32.mrf.mxu0  ;;  %v3744_v56 = vpop.f32.mrf.mxu1  ;;  %v910_v37 = vrot.slane %v9653_v19, %v9260_v22 }
 0x1f0   : > { %v4115_v57 = vmax.f32 %v3702_v50, 0.0  ;;  %v4117_v58 = vmax.f32 %v3743_v51, 0.0  ;;  %7160 = vmatpush1.xpose.msra.mxu1 %v4213_v48  ;;  %7230 = vmatpush1.xpose.msra.mxu0 %v4215_v49  ;;  %v4221_v48 = vld [vmem:[%s8887_s13 + $0x2c0] sm:$0xff]  ;;  %v4223_v49 = vld [vmem:[%s8887_s13 + $0x2d0] sm:$0xff]  ;;  %v4324_v51 = vld [vmem:[%s8887_s13 + $0x5f8] sm:$0xff] }
 0x1f1   : > { %v3704_v61 = vpop.f32.mrf.mxu0  ;;  %v3745_v62 = vpop.f32.mrf.mxu1  ;;  %7297 = vmatprep.subr.mxu1 %v4316_v52  ;;  %7367 = vmatprep.subr.mxu0 %v4318_v53  ;;  %v4326_v52 = vld [vmem:[%s8887_s13 + $0x608] sm:$0xff] }
 0x1f2   : > { %7193 = vmatprep.mubr.f32.mxu1 %v4115_v57  ;;  %7263 = vmatprep.mubr.f32.mxu0 %v4117_v58  ;;  %v930_v58 = vrot.slane %v9653_v19, %v9278_v34  ;;  %v922_v62 = vrot.slane %v9653_v19, %v9281_v39  ;;  %v4226_v34 = vld [vmem:[%s8887_s13 + $0x2e8] sm:$0xff] }
 0x1f3   : > { %v3781_v7 = vpop.f32.mrf.mxu0  ;;  %7194 = vmatmul.mubr.f32.vlgmr.msra.gmra.mxu1 %v4114_v60  ;;  %v3822_v8 = vpop.f32.mrf.mxu1  ;;  %7264 = vmatmul.mubr.f32.vlgmr.msra.gmra.mxu0 %v4116_v54 }
 0x1f4   : > { %v3823_v9 = vadd.f32 %v3822_v8, %v898_v59  ;;  %7298 = vmatpush1.xpose.msra.mxu1 %v4315_v0  ;;  %7368 = vmatpush1.xpose.msra.mxu0 %v4317_v1  ;;  %v3782_v11 = vadd.f32 %v3781_v7, %v890_v63  ;;  %v4323_v63 = vld [vmem:[%s8887_s13 + $0x5f0] sm:$0xff]  ;;  %v4325_v0 = vld [vmem:[%s8887_s13 + $0x600] sm:$0xff]  ;;  %v926_v1 = vrot.slane %v9653_v19, %v9283_v42 }
 0x1f5   : > { %v3783_v12 = vpop.f32.mrf.mxu0  ;;  %v3824_v13 = vpop.f32.mrf.mxu1  ;;  %7299 = vmatprep.subr.mxu1 %v4218_v5  ;;  %7369 = vmatprep.subr.mxu0 %v4220_v6  ;;  %v4225_v42 = vld [vmem:[%s8887_s13 + $0x2e0] sm:$0xff] }
 0x1f6   : > { %v3784_v16 = vadd.f32 %v3783_v12, %v894_v2  ;;  %v3825_v10 = vadd.f32 %v3824_v13, %v902_v4  ;;  %v4120_v25 = vmax.f32 %v3823_v9, 0.0  ;;  %v4118_v30 = vmax.f32 %v3782_v11, 0.0  ;;  %v4228_v4 = vld [vmem:[%s8887_s13 + $0x2f8] sm:$0xff]  ;;  %v4227_v11 = vld [vmem:[%s8887_s13 + $0x2f0] sm:$0xff] }
 0x1f7   : > { %v3785_v3 = vpop.f32.mrf.mxu0  ;;  %v3826_v26 = vpop.f32.mrf.mxu1  ;;  %v934_v2 = vrot.slane %v9653_v19, %v9286_v44  ;;  %v537_v13 = vld [vmem:[%s8881_s16 + $0x60] sm:$0x3] }
 0x1f8   : > { %v4119_v27 = vmax.f32 %v3784_v16, 0.0  ;;  %v4121_v28 = vmax.f32 %v3825_v10, 0.0  ;;  %7300 = vmatpush1.xpose.msra.mxu1 %v4217_v14  ;;  %7370 = vmatpush1.xpose.msra.mxu0 %v4219_v15  ;;  %v4328_v14 = vld [vmem:[%s8887_s13 + $0x618] sm:$0xff]  ;;  %v938_v26 = vrot.slane %v537_v13, %v9254_v18 }
 0x1f9   : > { %v3786_v31 = vpop.f32.mrf.mxu0  ;;  %v3827_v32 = vpop.f32.mrf.mxu1  ;;  %7437 = vmatprep.subr.mxu1 %v4320_v21  ;;  %7507 = vmatprep.subr.mxu0 %v4322_v24 }
 0x1fa   : > { %7333 = vmatprep.mubr.f32.mxu1 %v4119_v27  ;;  %7403 = vmatprep.mubr.f32.mxu0 %v4121_v28  ;;  %v4327_v27 = vld [vmem:[%s8887_s13 + $0x610] sm:$0xff]  ;;  %v942_v28 = vrot.slane %v537_v13, %v9260_v22 }
 0x1fb   : > { %v3863_v41 = vpop.f32.mrf.mxu0  ;;  %7334 = vmatmul.mubr.f32.vlgmr.msra.gmra.mxu1 %v4118_v30  ;;  %v3904_v43 = vpop.f32.mrf.mxu1  ;;  %7404 = vmatmul.mubr.f32.vlgmr.msra.gmra.mxu0 %v4120_v25 }
 0x1fc   : > { %v3905_v20 = vadd.f32 %v3904_v43, %v914_v29  ;;  %7438 = vmatpush1.xpose.msra.mxu1 %v4319_v35  ;;  %7508 = vmatpush1.xpose.msra.mxu0 %v4321_v36  ;;  %v3864_v45 = vadd.f32 %v3863_v41, %v906_v33  ;;  %v4230_v29 = vld [vmem:[%s8887_s13 + $0x308] sm:$0xff]  ;;  %v4229_v33 = vld [vmem:[%s8887_s13 + $0x300] sm:$0xff] }
 0x1fd   : > { %v3865_v46 = vpop.f32.mrf.mxu0  ;;  %v3906_v47 = vpop.f32.mrf.mxu1  ;;  %7439 = vmatprep.subr.mxu1 %v4222_v17  ;;  %7509 = vmatprep.subr.mxu0 %v4224_v40 }
 0x1fe   : > { %v3866_v23 = vadd.f32 %v3865_v46, %v910_v37  ;;  %v3907_v50 = vadd.f32 %v3906_v47, %v918_v38  ;;  %v4124_v53 = vmax.f32 %v3905_v20, 0.0  ;;  %v4122_v59 = vmax.f32 %v3864_v45, 0.0 }
 0x1ff   : > { %v3867_v54 = vpop.f32.mrf.mxu0  ;;  %v3908_v55 = vpop.f32.mrf.mxu1 }
 0x200   : > { %v4123_v56 = vmax.f32 %v3866_v23, 0.0  ;;  %v4125_v57 = vmax.f32 %v3907_v50, 0.0  ;;  %7440 = vmatpush1.xpose.msra.mxu1 %v4221_v48  ;;  %7510 = vmatpush1.xpose.msra.mxu0 %v4223_v49 }
 0x201   : > { %v3868_v60 = vpop.f32.mrf.mxu0  ;;  %v3909_v61 = vpop.f32.mrf.mxu1  ;;  %7577 = vmatprep.subr.mxu1 %v4324_v51  ;;  %7647 = vmatprep.subr.mxu0 %v4326_v52 }
 0x202   : > { %7473 = vmatprep.mubr.f32.mxu1 %v4123_v56  ;;  %7543 = vmatprep.mubr.f32.mxu0 %v4125_v57 }
 0x203   : > { %v3945_v5 = vpop.f32.mrf.mxu0  ;;  %7474 = vmatmul.mubr.f32.vlgmr.msra.gmra.mxu1 %v4122_v59  ;;  %v3986_v39 = vpop.f32.mrf.mxu1  ;;  %7544 = vmatmul.mubr.f32.vlgmr.msra.gmra.mxu0 %v4124_v53 }
 0x204   : > { %v3987_v6 = vadd.f32 %v3986_v39, %v930_v58  ;;  %7578 = vmatpush1.xpose.msra.mxu1 %v4323_v63  ;;  %7648 = vmatpush1.xpose.msra.mxu0 %v4325_v0  ;;  %v3946_v7 = vadd.f32 %v3945_v5, %v922_v62 }
 0x205   : > { %v3947_v8 = vpop.f32.mrf.mxu0  ;;  %v3988_v9 = vpop.f32.mrf.mxu1  ;;  %7579 = vmatprep.subr.mxu1 %v4226_v34  ;;  %7649 = vmatprep.subr.mxu0 %v4228_v4 }
 0x206   : > { %v3948_v44 = vadd.f32 %v3947_v8, %v926_v1  ;;  %v3989_v12 = vadd.f32 %v3988_v9, %v934_v2  ;;  %v4128_v15 = vmax.f32 %v3987_v6, 0.0  ;;  %v4126_v24 = vmax.f32 %v3946_v7, 0.0 }
 0x207   : > { %v3949_v16 = vpop.f32.mrf.mxu0  ;;  %v3990_v10 = vpop.f32.mrf.mxu1 }
 0x208   : > { %v4127_v19 = vmax.f32 %v3948_v44, 0.0  ;;  %v4129_v21 = vmax.f32 %v3989_v12, 0.0  ;;  %7580 = vmatpush1.xpose.msra.mxu1 %v4225_v42  ;;  %7650 = vmatpush1.xpose.msra.mxu0 %v4227_v11 }
 0x209   : > { %v3950_v25 = vpop.f32.mrf.mxu0  ;;  %v3991_v3 = vpop.f32.mrf.mxu1  ;;  %7717 = vmatprep.subr.mxu1 %v4328_v14 }
 0x20a   : > { %7613 = vmatprep.mubr.f32.mxu1 %v4127_v19  ;;  %7683 = vmatprep.mubr.f32.mxu0 %v4129_v21 }
 0x20b   : > { %v4027_v30 = vpop.f32.mrf.mxu0  ;;  %7614 = vmatmul.mubr.f32.vlgmr.msra.gmra.mxu1 %v4126_v24  ;;  %7684 = vmatmul.mubr.f32.vlgmr.msra.gmra.mxu0 %v4128_v15 }
 0x20c   : > { %7718 = vmatpush1.xpose.msra.mxu1 %v4327_v27  ;;  %v4028_v31 = vadd.f32 %v4027_v30, %v938_v26 }
 0x20d   : > { %v4029_v32 = vpop.f32.mrf.mxu0  ;;  %7719 = vmatprep.subr.mxu1 %v4230_v29 }
 0x20e   : > { %v4030_v35 = vadd.f32 %v4029_v32, %v942_v28  ;;  %v4130_v18 = vmax.f32 %v4028_v31, 0.0 }
 0x20f   : > { %v4031_v36 = vpop.f32.mrf.mxu0 }
 0x210   : > { %v4131_v37 = vmax.f32 %v4030_v35, 0.0  ;;  %7720 = vmatpush1.xpose.msra.mxu1 %v4229_v33 }
 0x211   : > { %v4032_v38 = vpop.f32.mrf.mxu0 }
 0x212   : > { %7753 = vmatprep.mubr.f32.mxu1 %v4131_v37 }
 0x213   : > { %v4395_v17 = vpop.f32.mrf.mxu1  ;;  %v4465_v40 = vpop.f32.mrf.mxu0  ;;  %7754 = vmatmul.mubr.f32.vlgmr.msra.gmra.mxu1 %v4130_v18 }
 0x214   : > { %v4466_v22 = vadd.f32 %v4465_v40, %v4395_v17 }
 0x215   : > { %v4397_v41 = vpop.f32.mrf.mxu1  ;;  %v4467_v43 = vpop.f32.mrf.mxu0 }
 0x21b   : > { %v4535_v20 = vpop.f32.mrf.mxu1  ;;  %v4605_v45 = vpop.f32.mrf.mxu0 }
 0x21c   : > { %v4536_v46 = vadd.f32 %v4535_v20, %v4466_v22 }
 0x21d   : > { %v4537_v47 = vpop.f32.mrf.mxu1  ;;  %v4607_v48 = vpop.f32.mrf.mxu0 }
 0x21e   : > { %v4606_v49 = vadd.f32 %v4605_v45, %v4536_v46 }
 0x223   : > { %v4675_v23 = vpop.f32.mrf.mxu1  ;;  %v4745_v50 = vpop.f32.mrf.mxu0 }
 0x224   : > { %v4676_v51 = vadd.f32 %v4675_v23, %v4606_v49 }
 0x225   : > { %v4677_v52 = vpop.f32.mrf.mxu1  ;;  %v4747_v53 = vpop.f32.mrf.mxu0 }
 0x226   : > { %v4746_v54 = vadd.f32 %v4745_v50, %v4676_v51 }
 0x22b   : > { %v4815_v55 = vpop.f32.mrf.mxu1  ;;  %v4885_v56 = vpop.f32.mrf.mxu0 }
 0x22c   : > { %v4816_v57 = vadd.f32 %v4815_v55, %v4746_v54 }
 0x22d   : > { %v4817_v58 = vpop.f32.mrf.mxu1  ;;  %v4887_v59 = vpop.f32.mrf.mxu0 }
 0x22e   : > { %v4886_v60 = vadd.f32 %v4885_v56, %v4816_v57 }
 0x233   : > { %v4955_v61 = vpop.f32.mrf.mxu1  ;;  %v5025_v62 = vpop.f32.mrf.mxu0 }
 0x234   : > { %v4956_v63 = vadd.f32 %v4955_v61, %v4886_v60 }
 0x235   : > { %v4957_v0 = vpop.f32.mrf.mxu1  ;;  %v5027_v1 = vpop.f32.mrf.mxu0 }
 0x236   : > { %v5026_v2 = vadd.f32 %v5025_v62, %v4956_v63 }
 0x23b   : > { %v5095_v34 = vpop.f32.mrf.mxu1  ;;  %v5165_v4 = vpop.f32.mrf.mxu0 }
 0x23c   : > { %v5096_v5 = vadd.f32 %v5095_v34, %v5026_v2 }
 0x23d   : > { %v5097_v39 = vpop.f32.mrf.mxu1  ;;  %v5167_v6 = vpop.f32.mrf.mxu0 }
 0x23e   : > { %v5166_v7 = vadd.f32 %v5165_v4, %v5096_v5 }
 0x243   : > { %v5235_v8 = vpop.f32.mrf.mxu1  ;;  %v5305_v9 = vpop.f32.mrf.mxu0 }
 0x244   : > { %v5236_v42 = vadd.f32 %v5235_v8, %v5166_v7 }
 0x245   : > { %v5237_v11 = vpop.f32.mrf.mxu1  ;;  %v5307_v44 = vpop.f32.mrf.mxu0 }
 0x246   : > { %v5306_v12 = vadd.f32 %v5305_v9, %v5236_v42 }
 0x24b   : > { %v5375_v13 = vpop.f32.mrf.mxu1  ;;  %v5445_v14 = vpop.f32.mrf.mxu0 }
 0x24c   : > { %v5376_v15 = vadd.f32 %v5375_v13, %v5306_v12 }
 0x24d   : > { %v5377_v16 = vpop.f32.mrf.mxu1  ;;  %v5447_v10 = vpop.f32.mrf.mxu0 }
 0x24e   : > { %v5446_v19 = vadd.f32 %v5445_v14, %v5376_v15 }
 0x253   : > { %v5515_v21 = vpop.f32.mrf.mxu1  ;;  %v5585_v24 = vpop.f32.mrf.mxu0 }
 0x254   : > { %v5516_v25 = vadd.f32 %v5515_v21, %v5446_v19 }
 0x255   : > { %v5517_v3 = vpop.f32.mrf.mxu1  ;;  %v5587_v26 = vpop.f32.mrf.mxu0 }
 0x256   : > { %v5586_v27 = vadd.f32 %v5585_v24, %v5516_v25 }
 0x25b   : > { %v5655_v28 = vpop.f32.mrf.mxu1  ;;  %v5725_v29 = vpop.f32.mrf.mxu0 }
 0x25c   : > { %v5656_v20 = vadd.f32 %v5655_v28, %v5586_v27 }
 0x25d   : > { %v5657_v30 = vpop.f32.mrf.mxu1  ;;  %v5727_v31 = vpop.f32.mrf.mxu0 }
 0x25e   : > { %v5726_v49 = vadd.f32 %v5725_v29, %v5656_v20 }
 0x263   : > { %v5795_v32 = vpop.f32.mrf.mxu1  ;;  %v5865_v33 = vpop.f32.mrf.mxu0 }
 0x264   : > { %v5796_v23 = vadd.f32 %v5795_v32, %v5726_v49 }
 0x265   : > { %v5797_v35 = vpop.f32.mrf.mxu1  ;;  %v5867_v36 = vpop.f32.mrf.mxu0 }
 0x266   : > { %v5866_v52 = vadd.f32 %v5865_v33, %v5796_v23 }
 0x26b   : > { %v5935_v37 = vpop.f32.mrf.mxu1  ;;  %v6005_v18 = vpop.f32.mrf.mxu0 }
 0x26c   : > { %v5936_v55 = vadd.f32 %v5935_v37, %v5866_v52 }
 0x26d   : > { %v5937_v38 = vpop.f32.mrf.mxu1  ;;  %v6007_v17 = vpop.f32.mrf.mxu0 }
 0x26e   : > { %v6006_v56 = vadd.f32 %v6005_v18, %v5936_v55 }
 0x273   : > { %v6075_v40 = vpop.f32.mrf.mxu1  ;;  %v6145_v22 = vpop.f32.mrf.mxu0 }
 0x274   : > { %v6076_v59 = vadd.f32 %v6075_v40, %v6006_v56 }
 0x275   : > { %v6077_v41 = vpop.f32.mrf.mxu1  ;;  %v6147_v43 = vpop.f32.mrf.mxu0 }
 0x276   : > { %v6146_v62 = vadd.f32 %v6145_v22, %v6076_v59 }
 0x27b   : > { %v6215_v45 = vpop.f32.mrf.mxu1  ;;  %v6285_v46 = vpop.f32.mrf.mxu0 }
 0x27c   : > { %v6216_v63 = vadd.f32 %v6215_v45, %v6146_v62 }
 0x27d   : > { %v6217_v47 = vpop.f32.mrf.mxu1  ;;  %v6287_v48 = vpop.f32.mrf.mxu0 }
 0x27e   : > { %v6286_v4 = vadd.f32 %v6285_v46, %v6216_v63 }
 0x283   : > { %v6355_v50 = vpop.f32.mrf.mxu1  ;;  %v6425_v51 = vpop.f32.mrf.mxu0 }
 0x284   : > { %v6356_v5 = vadd.f32 %v6355_v50, %v6286_v4 }
 0x285   : > { %v6357_v53 = vpop.f32.mrf.mxu1  ;;  %v6427_v54 = vpop.f32.mrf.mxu0 }
 0x286   : > { %v6426_v7 = vadd.f32 %v6425_v51, %v6356_v5  ;;  %v4132_v53 = vld [vmem:[%s9725_s5] sm:$0xff] }
 0x28b   : > { %v6495_v57 = vpop.f32.mrf.mxu1  ;;  %v6565_v58 = vpop.f32.mrf.mxu0 }
 0x28c   : > { %v6496_v42 = vadd.f32 %v6495_v57, %v6426_v7 }
 0x28d   : > { %v6497_v60 = vpop.f32.mrf.mxu1  ;;  %v6567_v61 = vpop.f32.mrf.mxu0 }
 0x28e   : > { %v6566_v11 = vadd.f32 %v6565_v58, %v6496_v42 }
 0x293   : > { %v6635_v0 = vpop.f32.mrf.mxu1  ;;  %v6705_v1 = vpop.f32.mrf.mxu0 }
 0x294   : > { %v6636_v13 = vadd.f32 %v6635_v0, %v6566_v11 }
 0x295   : > { %v6637_v2 = vpop.f32.mrf.mxu1  ;;  %v6707_v34 = vpop.f32.mrf.mxu0 }
 0x296   : > { %v6706_v16 = vadd.f32 %v6705_v1, %v6636_v13 }
 0x29b   : > { %v6775_v39 = vpop.f32.mrf.mxu1  ;;  %v6845_v6 = vpop.f32.mrf.mxu0 }
 0x29c   : > { %v6776_v10 = vadd.f32 %v6775_v39, %v6706_v16 }
 0x29d   : > { %v6777_v8 = vpop.f32.mrf.mxu1  ;;  %v6847_v9 = vpop.f32.mrf.mxu0 }
 0x29e   : > { %v6846_v3 = vadd.f32 %v6845_v6, %v6776_v10 }
 0x2a3   : > { %v6915_v44 = vpop.f32.mrf.mxu1  ;;  %v6985_v12 = vpop.f32.mrf.mxu0 }
 0x2a4   : > { %v6916_v26 = vadd.f32 %v6915_v44, %v6846_v3 }
 0x2a5   : > { %v6917_v14 = vpop.f32.mrf.mxu1  ;;  %v6987_v15 = vpop.f32.mrf.mxu0 }
 0x2a6   : > { %v6986_v29 = vadd.f32 %v6985_v12, %v6916_v26 }
 0x2ab   : > { %v7055_v19 = vpop.f32.mrf.mxu1  ;;  %v7125_v21 = vpop.f32.mrf.mxu0 }
 0x2ac   : > { %v7056_v32 = vadd.f32 %v7055_v19, %v6986_v29 }
 0x2ad   : > { %v7057_v24 = vpop.f32.mrf.mxu1  ;;  %v7127_v25 = vpop.f32.mrf.mxu0 }
 0x2ae   : > { %v7126_v33 = vadd.f32 %v7125_v21, %v7056_v32 }
 0x2b3   : > { %v7195_v27 = vpop.f32.mrf.mxu1  ;;  %v7265_v28 = vpop.f32.mrf.mxu0 }
 0x2b4   : > { %v7196_v37 = vadd.f32 %v7195_v27, %v7126_v33 }
 0x2b5   : > { %v7197_v30 = vpop.f32.mrf.mxu1  ;;  %v7267_v31 = vpop.f32.mrf.mxu0 }
 0x2b6   : > { %v7266_v17 = vadd.f32 %v7265_v28, %v7196_v37 }
 0x2bb   : > { %v7335_v35 = vpop.f32.mrf.mxu1  ;;  %v7405_v36 = vpop.f32.mrf.mxu0 }
 0x2bc   : > { %v7336_v40 = vadd.f32 %v7335_v35, %v7266_v17 }
 0x2bd   : > { %v7337_v18 = vpop.f32.mrf.mxu1  ;;  %v7407_v38 = vpop.f32.mrf.mxu0 }
 0x2be   : > { %v7406_v45 = vadd.f32 %v7405_v36, %v7336_v40 }
 0x2c3   : > { %v7475_v22 = vpop.f32.mrf.mxu1  ;;  %v7545_v41 = vpop.f32.mrf.mxu0 }
 0x2c4   : > { %v7476_v46 = vadd.f32 %v7475_v22, %v7406_v45 }
 0x2c5   : > { %v7477_v43 = vpop.f32.mrf.mxu1  ;;  %v7547_v20 = vpop.f32.mrf.mxu0 }
 0x2c6   : > { %v7546_v49 = vadd.f32 %v7545_v41, %v7476_v46 }
 0x2cb   : > { %v7615_v47 = vpop.f32.mrf.mxu1  ;;  %v7685_v48 = vpop.f32.mrf.mxu0 }
 0x2cc   : > { %v7616_v51 = vadd.f32 %v7615_v47, %v7546_v49 }
 0x2cd   : > { %v7617_v23 = vpop.f32.mrf.mxu1  ;;  %v7687_v50 = vpop.f32.mrf.mxu0 }
 0x2ce   : > { %v7686_v52 = vadd.f32 %v7685_v48, %v7616_v51 }
 0x2d3   : > { %v7755_v54 = vpop.f32.mrf.mxu1 }
 0x2d4   : > { %v7756_v55 = vadd.f32 %v7755_v54, %v7686_v52  ;;  %7765 = sbr.rel (%p8124_p0) target bundleno = 741 (0x2e5), region = 64 }
 0x2d5   : > { %v7757_v56 = vpop.f32.mrf.mxu1 }
 0x2d6   : > { %v7759_v57 = vadd.f32 %v7756_v55, %v4132_v53 }
 0x2d8   : > { %7761 = vst.msk [vmem:[%s9725_s5] sm:$0xff] %vm7760_vm2, %v7759_v57 }
 0x2d9   : > { %v8125_v59 = vld [vmem:[#allocation7] ss:$0 sm:$0xff] }
 0x2df   : > { %v7766_v58 = vld [vmem:[%s9725_s5] sm:$0xff] }
 0x2e0   : > { %v7774_v60 = vadd.f32 %v8125_v59, %v7766_v58 }
 0x2e2   : > { %v7775_v61 = vmax.f32 %v7774_v60, 0.0 }
 0x2e4   : > { %7776 = vst.msk [vmem:[%s9725_s5] sm:$0xff] %vm7760_vm2, %v7775_v61 }
 0x2e5 PF: > { %p19_p1 = scmp.ge.s32.totalorder %s8716_s22, 6   ;;  %s9742_s18 = smov %s8643_s19 }
 0x2e6   : > { %s9743_s19 = smov %s8647_s20  ;;  %s9744_s20 = smov %s8726_s25 }
 0x2e7   : > { %s9745_s21 = smov %s8716_s22  ;;  %21 = sbr.rel (!%p19_p1) target bundleno = 6 (0x6), region = 112 }
 0x2ec   :  { %7788 = vsyncpa [#allocation3], 1 }
 0x2ed   :  { %7790 = vsyncpa [#allocation3 + $0x1], 1 }
 0x2ee   :  { %7791 = vsyncpa [#allocation5], 1 }
 0x2ef   :  { %7793 = vsyncpa [#allocation5 + $0x1], 1 }
 0x2f0   :  { %7794 = vsyncpa [#allocation8], 1 }

</bundles_post_ra>
